<compile_context>
chip_gen: v7x
topology: tpu7x:2x2x1
jax: 0.10.0
libtpu: 0.0.40
codegen_flags: <defaults>
</compile_context>

<pallas_src>
import jax
import jax.numpy as jnp
from jax.experimental import pallas as pl
from jax.experimental.pallas import tpu as pltpu

NUM_LAYERS = 2  # num_mp_layers in the PyTorch module


def gnn_kernel(emb_ref, gcat_ref, scat_ref, dist_ref, pool_ref,
               wmsrc_ref, wmdst_ref, wmdist_ref, bmsg_ref,
               wupd_ref, bupd_ref, wres_ref,
               w1_ref, b1_ref, w2_ref, b2_ref,
               out_ref,
               h_scr, hsd_scr, aggr_scr):
    l = pl.program_id(0)          # message-passing layer
    et = pl.program_id(1)         # edge tile
    n_l = pl.num_programs(0)
    n_et = pl.num_programs(1)

    # layer 0, first edge tile: load the initial node embeddings into the resident node state.
    @pl.when((l == 0) & (et == 0))
    def _():
        h_scr[...] = emb_ref[...]

    # first edge tile of every layer: node-level pre-activations (weights BEFORE gather)
    # and zero the scatter-sum accumulator.
    @pl.when(et == 0)
    def _():
        h = h_scr[...]
        hs = jnp.dot(h, wmsrc_ref[0], preferred_element_type=jnp.float32)      # [N, H]
        hd = jnp.dot(h, wmdst_ref[0], preferred_element_type=jnp.float32)      # [N, H]
        hsd_scr[...] = jnp.concatenate([hs, hd], axis=0).astype(hsd_scr.dtype)  # [2N, H] bf16
        aggr_scr[...] = jnp.zeros_like(aggr_scr)

    # per-edge-tile message: ONE fused gather dot (bf16 MXU, f32 acc) + f32 VPU epilogue.
    edge_feat = jnp.dot(gcat_ref[...], hsd_scr[...],
                        preferred_element_type=jnp.float32)                     # [Et, H]
    msg = jnp.maximum(edge_feat + dist_ref[...] * wmdist_ref[0] + bmsg_ref[0], 0.0)
    # scatter(messages, col, 'sum') via the pre-transposed [N, Et] one-hot; f32 accumulator.
    aggr_scr[...] += jnp.dot(scat_ref[...], msg.astype(jnp.bfloat16),
                             preferred_element_type=jnp.float32)                # [N, H]

    # last edge tile of the layer: fused-K node-update MLP + residual projection.
    @pl.when(et == n_et - 1)
    def _():
        h = h_scr[...]
        cat = jnp.concatenate([h, aggr_scr[...]], axis=-1)                      # [N, 2H]
        upd = jnp.maximum(
            jnp.dot(cat, wupd_ref[0], preferred_element_type=jnp.float32) + bupd_ref[0], 0.0)
        h_scr[...] = jnp.dot(h, wres_ref[0], preferred_element_type=jnp.float32) + upd

    # final grid step: sum-pool per graph (pre-transposed one-hot) + prediction MLP.
    @pl.when((l == n_l - 1) & (et == n_et - 1))
    def _():
        pooled = jnp.dot(pool_ref[...], h_scr[...].astype(jnp.bfloat16),
                         preferred_element_type=jnp.float32)                    # [G, H]
        hid = jnp.maximum(
            jnp.dot(pooled, w1_ref[...], preferred_element_type=jnp.float32) + b1_ref[...], 0.0)
        out_ref[...] = jnp.dot(hid, w2_ref[...],
                               preferred_element_type=jnp.float32) + b2_ref[...]


def _round_up(x, m):
    return ((x + m - 1) // m) * m


def equivariant_gnn_forward(params, z, pos, edge_index, batch, num_graphs, *, edge_tile=512):
    """Glue (embedding lookup, padded one-hot / distance construction) in JAX;
    all matmul / MLP / scatter / pooling compute in a single Pallas kernel."""
    emb = params["emb_table"][z].astype(jnp.float32)             # [N, H] nn.Embedding lookup
    row, col = edge_index
    n = int(z.shape[0])
    e = int(row.shape[0])
    h = int(emb.shape[1])
    num_layers = int(params["wres"].shape[0])
    t = int(params["w2"].shape[1])

    # MXU / vreg friendly padded sizes.
    HP = _round_up(h, 128)                  # hidden -> full lane width
    NP = _round_up(n, 8)                    # nodes  -> f32 sublane multiple
    GP = _round_up(num_graphs, 8)           # graphs -> f32 sublane multiple
    TP = _round_up(t, 128)                  # target -> lane-dense output, sliced after
    e_tile = edge_tile if e >= edge_tile else _round_up(e, 128)   # lane dim of scatter tile
    EP = _round_up(e, e_tile)               # edges  -> multiple of the edge tile

    f32, bf16 = jnp.float32, jnp.bfloat16

    emb_p = jnp.zeros((NP, HP), f32).at[:n, :h].set(emb)

    # fused gather matrix [E, 2N]: cols [0,N) = one_hot(row), cols [N,2N) = one_hot(col). bf16 exact.
    g_row = jax.nn.one_hot(row, NP, dtype=f32)
    g_col = jax.nn.one_hot(col, NP, dtype=f32)
    g_cat = (jnp.zeros((EP, 2 * NP), f32)
             .at[:e, :NP].set(g_row).at[:e, NP:].set(g_col)).astype(bf16)
    # pre-transposed scatter matrix [N, E]  (segment-sum over `col`).
    scat = jnp.zeros((NP, EP), f32).at[:, :e].set(g_col.T).astype(bf16)
    # squared pairwise distances [E, 1] (kept f32).
    dist = jnp.zeros((EP, 1), f32).at[:e].set(
        jnp.sum((pos[row] - pos[col]) ** 2, axis=1, keepdims=True))
    # pre-transposed pooling matrix [G, N].
    pool = jnp.zeros((GP, NP), f32).at[:num_graphs, :n].set(
        jax.nn.one_hot(batch, num_graphs, dtype=f32).T).astype(bf16)

    def pad2(w, r, c):
        return jnp.zeros((r, c), f32).at[:w.shape[0], :w.shape[1]].set(w)

    def pad3(w, r, c):
        return jnp.zeros((w.shape[0], r, c), f32).at[:, :w.shape[1], :w.shape[2]].set(w)

    wmsrc = pad3(params["wmsrc"], HP, HP)
    wmdst = pad3(params["wmdst"], HP, HP)
    wmdist = pad3(params["wmdist"], 1, HP)
    bmsg = pad3(params["bmsg"], 1, HP)
    # fused-K node-update weight: rows [0,H) self part, rows [HP, HP+H) aggregated-message part.
    wupd = (jnp.zeros((num_layers, 2 * HP, HP), f32)
            .at[:, :h, :h].set(params["wupself"])
            .at[:, HP:HP + h, :h].set(params["wupmsg"]))
    bupd = pad3(params["bupd"], 1, HP)
    wres = pad3(params["wres"], HP, HP)
    w1 = pad2(params["w1"], HP, HP)
    b1 = pad2(params["b1"], 1, HP)
    w2 = pad2(params["w2"], HP, TP)
    b2 = pad2(params["b2"], 1, TP)

    inputs = (emb_p, g_cat, scat, dist, pool,
              wmsrc, wmdst, wmdist, bmsg, wupd, bupd, wres, w1, b1, w2, b2)

    grid = (num_layers, EP // e_tile)

    in_specs = [
        pl.BlockSpec((NP, HP), lambda li, ei: (0, 0)),             # emb
        pl.BlockSpec((e_tile, 2 * NP), lambda li, ei: (ei, 0)),    # fused gather one-hot (bf16)
        pl.BlockSpec((NP, e_tile), lambda li, ei: (0, ei)),        # scatter^T one-hot (bf16)
        pl.BlockSpec((e_tile, 1), lambda li, ei: (ei, 0)),         # squared distances
        pl.BlockSpec((GP, NP), lambda li, ei: (0, 0)),             # pooling one-hot (bf16)
        pl.BlockSpec((1, HP, HP), lambda li, ei: (li, 0, 0)),      # wmsrc[l]
        pl.BlockSpec((1, HP, HP), lambda li, ei: (li, 0, 0)),      # wmdst[l]
        pl.BlockSpec((1, 1, HP), lambda li, ei: (li, 0, 0)),       # wmdist[l]
        pl.BlockSpec((1, 1, HP), lambda li, ei: (li, 0, 0)),       # bmsg[l]
        pl.BlockSpec((1, 2 * HP, HP), lambda li, ei: (li, 0, 0)),  # wupd[l] (stacked K)
        pl.BlockSpec((1, 1, HP), lambda li, ei: (li, 0, 0)),       # bupd[l]
        pl.BlockSpec((1, HP, HP), lambda li, ei: (li, 0, 0)),      # wres[l]
        pl.BlockSpec((HP, HP), lambda li, ei: (0, 0)),             # w1
        pl.BlockSpec((1, HP), lambda li, ei: (0, 0)),              # b1
        pl.BlockSpec((HP, TP), lambda li, ei: (0, 0)),             # w2
        pl.BlockSpec((1, TP), lambda li, ei: (0, 0)),              # b2
    ]

    flops = (2 * num_layers * (EP * (2 * NP) * HP      # fused gather matmul
                               + NP * EP * HP          # scatter-sum matmul
                               + 2 * NP * HP * HP      # node pre-activations
                               + NP * (2 * HP) * HP    # fused node-update MLP
                               + NP * HP * HP)         # residual projection
             + 2 * (GP * NP * HP + GP * HP * HP + GP * HP * TP))
    bytes_accessed = int(sum(x.size * x.dtype.itemsize for x in inputs) + GP * TP * 4)

    out = pl.pallas_call(
        gnn_kernel,
        out_shape=jax.ShapeDtypeStruct((GP, TP), jnp.float32),
        grid=grid,
        in_specs=in_specs,
        out_specs=pl.BlockSpec((GP, TP), lambda li, ei: (0, 0)),
        scratch_shapes=[
            pltpu.VMEM((NP, HP), jnp.float32),        # resident node state h
            pltpu.VMEM((2 * NP, HP), jnp.bfloat16),   # stacked [h@Wsrc ; h@Wdst] pre-activations
            pltpu.VMEM((NP, HP), jnp.float32),        # scatter-sum accumulator
        ],
        compiler_params=pltpu.CompilerParams(
            # layer axis carries h; edge axis feeds the accumulator -> both sequential.
            dimension_semantics=("arbitrary", "arbitrary"),
            vmem_limit_bytes=32 * 1024 * 1024,
        ),
        cost_estimate=pl.CostEstimate(flops=flops, transcendentals=0,
                                      bytes_accessed=bytes_accessed),
    )(*inputs)
    return out[:num_graphs, :t]


def init_params(key, hidden, target=1, num_layers=NUM_LAYERS):
    """Deterministic synthetic parameters matching the module's shapes
    (final_embedding_size defaults to hidden_channels). Linear weights stored [in, out]."""
    ks = jax.random.split(key, 13)
    scale = 0.1

    def nrm(k, shape):
        return scale * jax.random.normal(k, shape, dtype=jnp.float32)

    h = hidden
    return dict(
        emb_table=nrm(ks[0], (100, h)),                   # nn.Embedding(100, hidden)
        wres=nrm(ks[1], (num_layers, h, h)),              # residual_proj (no bias)
        wmsrc=nrm(ks[2], (num_layers, h, h)),             # message_mlp weight, source part
        wmdst=nrm(ks[3], (num_layers, h, h)),             # message_mlp weight, target part
        wmdist=nrm(ks[4], (num_layers, 1, h)),            # message_mlp weight, distance part
        bmsg=nrm(ks[5], (num_layers, 1, h)),              # message_mlp bias
        wupself=nrm(ks[6], (num_layers, h, h)),           # node_update_mlp weight, self part
        wupmsg=nrm(ks[7], (num_layers, h, h)),            # node_update_mlp weight, aggr part
        bupd=nrm(ks[8], (num_layers, 1, h)),              # node_update_mlp bias
        w1=nrm(ks[9], (h, h)),                            # f_predict Linear 1
        b1=nrm(ks[10], (1, h)),
        w2=nrm(ks[11], (h, target)),                      # f_predict Linear 2
        b2=nrm(ks[12], (1, target)),
    )


def reference_forward(params, z, pos, edge_index, batch, num_graphs):
    """Pure-JAX f32 reference mirroring the PyTorch forward (gather + segment_sum)."""
    h = params["emb_table"][z]
    row, col = edge_index
    diff = pos[row] - pos[col]
    dist = jnp.sum(diff * diff, axis=1, keepdims=True)
    for l in range(NUM_LAYERS):
        xi, xj = h[row], h[col]
        msg_in = jnp.concatenate([xi, xj, dist], axis=-1)
        wmsg = jnp.concatenate(
            [params["wmsrc"][l], params["wmdst"][l], params["wmdist"][l]], axis=0)
        msg = jax.nn.relu(msg_in @ wmsg + params["bmsg"][l])
        aggr = jax.ops.segment_sum(msg, col, num_segments=h.shape[0])
        upd_in = jnp.concatenate([h, aggr], axis=-1)
        wupd = jnp.concatenate([params["wupself"][l], params["wupmsg"][l]], axis=0)
        h = h @ params["wres"][l] + jax.nn.relu(upd_in @ wupd + params["bupd"][l])
    pooled = jax.ops.segment_sum(h, batch, num_segments=num_graphs)
    hid = jax.nn.relu(pooled @ params["w1"] + params["b1"])
    return hid @ params["w2"] + params["b2"]


if __name__ == "__main__":
    key = jax.random.PRNGKey(0)
    hidden = 32
    num_graphs = 2
    nodes_per_graph = 8
    n_nodes = num_graphs * nodes_per_graph

    k_z, k_pos, k_p = jax.random.split(key, 3)
    z = jax.random.randint(k_z, (n_nodes,), 0, 100)                   # atomic numbers
    pos = jax.random.normal(k_pos, (n_nodes, 3), dtype=jnp.float32)   # 3-D coordinates

    # complete_edge_index: fully-connected graph per molecule, no self loops
    rows, cols = [], []
    for g in range(num_graphs):
        off = g * nodes_per_graph
        for i in range(nodes_per_graph):
            for j in range(nodes_per_graph):
                if i != j:
                    rows.append(off + i)
                    cols.append(off + j)
    edge_index = (jnp.asarray(rows, dtype=jnp.int32),
                  jnp.asarray(cols, dtype=jnp.int32))
    batch = jnp.repeat(jnp.arange(num_graphs, dtype=jnp.int32), nodes_per_graph)

    params = init_params(k_p, hidden)

    out = equivariant_gnn_forward(params, z, pos, edge_index, batch, num_graphs)
    out = jax.block_until_ready(out)

    ref = reference_forward(params, z, pos, edge_index, batch, num_graphs)
    assert out.shape == (num_graphs, 1)
    # Tolerance sized for bf16 MXU operands with f32 accumulation (2^-9 relative per rounding,
    # accumulated over in-degree / hidden-dim dot lengths across 2 MP layers); f32 reference.
    assert jnp.allclose(out, ref, rtol=5e-2, atol=5e-2), (out, ref)
    print("KERNEL_OK")
</pallas_src>

<mosaic_0001>
module attributes {stable_mosaic.version = 11 : i64} {
  func.func @gnn_kernel(%arg0: i32, %arg1: i32, %arg2: memref<16x128xf32, #tpu.memory_space<vmem>>, %arg3: memref<128x32xbf16, #tpu.memory_space<vmem>>, %arg4: memref<16x128xbf16, #tpu.memory_space<vmem>>, %arg5: memref<128x1xf32, #tpu.memory_space<vmem>>, %arg6: memref<8x16xbf16, #tpu.memory_space<vmem>>, %arg7: memref<1x128x128xf32, #tpu.memory_space<vmem>>, %arg8: memref<1x128x128xf32, #tpu.memory_space<vmem>>, %arg9: memref<1x1x128xf32, #tpu.memory_space<vmem>>, %arg10: memref<1x1x128xf32, #tpu.memory_space<vmem>>, %arg11: memref<1x256x128xf32, #tpu.memory_space<vmem>>, %arg12: memref<1x1x128xf32, #tpu.memory_space<vmem>>, %arg13: memref<1x128x128xf32, #tpu.memory_space<vmem>>, %arg14: memref<128x128xf32, #tpu.memory_space<vmem>>, %arg15: memref<1x128xf32, #tpu.memory_space<vmem>>, %arg16: memref<128x128xf32, #tpu.memory_space<vmem>>, %arg17: memref<1x128xf32, #tpu.memory_space<vmem>>, %arg18: memref<8x128xf32, #tpu.memory_space<vmem>>, %arg19: memref<16x128xf32, #tpu.memory_space<vmem>>, %arg20: memref<32x128xbf16, #tpu.memory_space<vmem>>, %arg21: memref<16x128xf32, #tpu.memory_space<vmem>>) attributes {dimension_semantics = [#tpu.dimension_semantics<arbitrary>, #tpu.dimension_semantics<arbitrary>], iteration_bounds = array<i64: 2, 1>, scalar_prefetch = 0 : i64, scratch_operands = 3 : i64, tpu.core_type = #tpu.core_type<tc>, window_params = [{pipeline_mode = #tpu.pipeline_mode<synchronous>, transform_indices = @transform_0, window_bounds = array<i64: 16, 128>}, {transform_indices = @transform_1, window_bounds = array<i64: 128, 32>}, {transform_indices = @transform_2, window_bounds = array<i64: 16, 128>}, {transform_indices = @transform_3, window_bounds = array<i64: 128, 1>}, {pipeline_mode = #tpu.pipeline_mode<synchronous>, transform_indices = @transform_4, window_bounds = array<i64: 8, 16>}, {transform_indices = @transform_5, window_bounds = array<i64: 1, 128, 128>}, {transform_indices = @transform_6, window_bounds = array<i64: 1, 128, 128>}, {transform_indices = @transform_7, window_bounds = array<i64: 1, 1, 128>}, {transform_indices = @transform_8, window_bounds = array<i64: 1, 1, 128>}, {transform_indices = @transform_9, window_bounds = array<i64: 1, 256, 128>}, {transform_indices = @transform_10, window_bounds = array<i64: 1, 1, 128>}, {transform_indices = @transform_11, window_bounds = array<i64: 1, 128, 128>}, {pipeline_mode = #tpu.pipeline_mode<synchronous>, transform_indices = @transform_12, window_bounds = array<i64: 128, 128>}, {pipeline_mode = #tpu.pipeline_mode<synchronous>, transform_indices = @transform_13, window_bounds = array<i64: 1, 128>}, {pipeline_mode = #tpu.pipeline_mode<synchronous>, transform_indices = @transform_14, window_bounds = array<i64: 128, 128>}, {pipeline_mode = #tpu.pipeline_mode<synchronous>, transform_indices = @transform_15, window_bounds = array<i64: 1, 128>}, {pipeline_mode = #tpu.pipeline_mode<synchronous>, transform_indices = @transform_16, window_bounds = array<i64: 8, 128>}]} {
    %c0_i32 = arith.constant 0 : i32
    %0 = arith.cmpi eq, %arg0, %c0_i32 : i32
    %c0_i32_0 = arith.constant 0 : i32
    %1 = arith.cmpi eq, %arg1, %c0_i32_0 : i32
    %2 = arith.andi %0, %1 : i1
    %3 = arith.extui %2 : i1 to i32
    %c0_i32_1 = arith.constant 0 : i32
    %4 = arith.cmpi ne, %3, %c0_i32_1 : i32
    scf.if %4 {
      %c0_27 = arith.constant 0 : index
      %c0_28 = arith.constant 0 : index
      %38 = vector.load %arg2[%c0_27, %c0_28] : memref<16x128xf32, #tpu.memory_space<vmem>>, vector<16x128xf32>
      %c0_29 = arith.constant 0 : index
      %c0_30 = arith.constant 0 : index
      %39 = vector.load %arg19[%c0_29, %c0_30] : memref<16x128xf32, #tpu.memory_space<vmem>>, vector<16x128xf32>
      tpu.vector_store %arg19[%c0_29, %c0_30], %38 {strides = array<i32>} : memref<16x128xf32, #tpu.memory_space<vmem>>, vector<16x128xf32>,
    } else {
    }
    %c0_i32_2 = arith.constant 0 : i32
    %5 = arith.cmpi eq, %arg1, %c0_i32_2 : i32
    %6 = arith.extui %5 : i1 to i32
    %c0_i32_3 = arith.constant 0 : i32
    %7 = arith.cmpi ne, %6, %c0_i32_3 : i32
    scf.if %7 {
      %c0_27 = arith.constant 0 : index
      %c0_28 = arith.constant 0 : index
      %38 = vector.load %arg19[%c0_27, %c0_28] : memref<16x128xf32, #tpu.memory_space<vmem>>, vector<16x128xf32>
      %c0_29 = arith.constant 0 : index
      %c0_30 = arith.constant 0 : index
      %c0_31 = arith.constant 0 : index
      %39 = vector.load %arg7[%c0_29, %c0_30, %c0_31] : memref<1x128x128xf32, #tpu.memory_space<vmem>>, vector<1x128x128xf32>
      %40 = vector.shape_cast %39 : vector<1x128x128xf32> to vector<128x128xf32>
      %cst_32 = arith.constant dense<0.000000e+00> : vector<16x128xf32>
      %41 = tpu.matmul %38, %40, %cst_32 {dimension_numbers = #tpu.dot_dimension_numbers<[1], [0], [0], [1], [0, 0, 1, 1], [], []>} : vector<16x128xf32>, vector<128x128xf32>, vector<16x128xf32> -> vector<16x128xf32>
      %c0_33 = arith.constant 0 : index
      %c0_34 = arith.constant 0 : index
      %c0_35 = arith.constant 0 : index
      %42 = vector.load %arg8[%c0_33, %c0_34, %c0_35] : memref<1x128x128xf32, #tpu.memory_space<vmem>>, vector<1x128x128xf32>
      %43 = vector.shape_cast %42 : vector<1x128x128xf32> to vector<128x128xf32>
      %cst_36 = arith.constant dense<0.000000e+00> : vector<16x128xf32>
      %44 = tpu.matmul %38, %43, %cst_36 {dimension_numbers = #tpu.dot_dimension_numbers<[1], [0], [0], [1], [0, 0, 1, 1], [], []>} : vector<16x128xf32>, vector<128x128xf32>, vector<16x128xf32> -> vector<16x128xf32>
      %45 = tpu.concatenate %41, %44 in 0 : vector<16x128xf32>, vector<16x128xf32> -> vector<32x128xf32>
      %46 = arith.truncf %45 : vector<32x128xf32> to vector<32x128xbf16>
      %c0_37 = arith.constant 0 : index
      %c0_38 = arith.constant 0 : index
      %47 = vector.load %arg20[%c0_37, %c0_38] : memref<32x128xbf16, #tpu.memory_space<vmem>>, vector<32x128xbf16>
      tpu.vector_store %arg20[%c0_37, %c0_38], %46 {strides = array<i32>} : memref<32x128xbf16, #tpu.memory_space<vmem>>, vector<32x128xbf16>,
      %cst_39 = arith.constant 0.000000e+00 : f32
      %48 = vector.broadcast %cst_39 : f32 to vector<16x128xf32>
      %c0_40 = arith.constant 0 : index
      %c0_41 = arith.constant 0 : index
      %49 = vector.load %arg21[%c0_40, %c0_41] : memref<16x128xf32, #tpu.memory_space<vmem>>, vector<16x128xf32>
      tpu.vector_store %arg21[%c0_40, %c0_41], %48 {strides = array<i32>} : memref<16x128xf32, #tpu.memory_space<vmem>>, vector<16x128xf32>,
    } else {
    }
    %c0 = arith.constant 0 : index
    %c0_4 = arith.constant 0 : index
    %8 = vector.load %arg3[%c0, %c0_4] : memref<128x32xbf16, #tpu.memory_space<vmem>>, vector<128x32xbf16>
    %c0_5 = arith.constant 0 : index
    %c0_6 = arith.constant 0 : index
    %9 = vector.load %arg20[%c0_5, %c0_6] : memref<32x128xbf16, #tpu.memory_space<vmem>>, vector<32x128xbf16>
    %cst = arith.constant dense<0.000000e+00> : vector<128x128xf32>
    %10 = tpu.matmul %8, %9, %cst {dimension_numbers = #tpu.dot_dimension_numbers<[1], [0], [0], [1], [0, 0, 1, 1], [], []>} : vector<128x32xbf16>, vector<32x128xbf16>, vector<128x128xf32> -> vector<128x128xf32>
    %c0_7 = arith.constant 0 : index
    %c0_8 = arith.constant 0 : index
    %11 = vector.load %arg5[%c0_7, %c0_8] : memref<128x1xf32, #tpu.memory_space<vmem>>, vector<128x1xf32>
    %c0_9 = arith.constant 0 : index
    %c0_10 = arith.constant 0 : index
    %c0_11 = arith.constant 0 : index
    %12 = vector.load %arg9[%c0_9, %c0_10, %c0_11] : memref<1x1x128xf32, #tpu.memory_space<vmem>>, vector<1x1x128xf32>
    %13 = vector.shape_cast %12 : vector<1x1x128xf32> to vector<1x128xf32>
    %14 = vector.broadcast %11 : vector<128x1xf32> to vector<128x128xf32>
    %15 = vector.broadcast %13 : vector<1x128xf32> to vector<128x128xf32>
    %16 = arith.mulf %14, %15 : vector<128x128xf32>
    %17 = arith.addf %10, %16 : vector<128x128xf32>
    %c0_12 = arith.constant 0 : index
    %c0_13 = arith.constant 0 : index
    %c0_14 = arith.constant 0 : index
    %18 = vector.load %arg10[%c0_12, %c0_13, %c0_14] : memref<1x1x128xf32, #tpu.memory_space<vmem>>, vector<1x1x128xf32>
    %19 = vector.shape_cast %18 : vector<1x1x128xf32> to vector<1x128xf32>
    %20 = vector.broadcast %19 : vector<1x128xf32> to vector<128x128xf32>
    %21 = arith.addf %17, %20 : vector<128x128xf32>
    %cst_15 = arith.constant 0.000000e+00 : f32
    %22 = vector.broadcast %cst_15 : f32 to vector<128x128xf32>
    %23 = arith.maximumf %21, %22 : vector<128x128xf32>
    %c0_16 = arith.constant 0 : index
    %c0_17 = arith.constant 0 : index
    %24 = vector.load %arg21[%c0_16, %c0_17] : memref<16x128xf32, #tpu.memory_space<vmem>>, vector<16x128xf32>
    %c0_18 = arith.constant 0 : index
    %c0_19 = arith.constant 0 : index
    %25 = vector.load %arg4[%c0_18, %c0_19] : memref<16x128xbf16, #tpu.memory_space<vmem>>, vector<16x128xbf16>
    %26 = arith.truncf %23 : vector<128x128xf32> to vector<128x128xbf16>
    %cst_20 = arith.constant dense<0.000000e+00> : vector<16x128xf32>
    %27 = tpu.matmul %25, %26, %cst_20 {dimension_numbers = #tpu.dot_dimension_numbers<[1], [0], [0], [1], [0, 0, 1, 1], [], []>} : vector<16x128xbf16>, vector<128x128xbf16>, vector<16x128xf32> -> vector<16x128xf32>
    %28 = arith.addf %24, %27 : vector<16x128xf32>
    %c0_21 = arith.constant 0 : index
    %c0_22 = arith.constant 0 : index
    %29 = vector.load %arg21[%c0_21, %c0_22] : memref<16x128xf32, #tpu.memory_space<vmem>>, vector<16x128xf32>
    tpu.vector_store %arg21[%c0_21, %c0_22], %28 {strides = array<i32>} : memref<16x128xf32, #tpu.memory_space<vmem>>, vector<16x128xf32>,
    %c0_i32_23 = arith.constant 0 : i32
    %30 = arith.cmpi eq, %arg1, %c0_i32_23 : i32
    %31 = arith.extui %30 : i1 to i32
    %c0_i32_24 = arith.constant 0 : i32
    %32 = arith.cmpi ne, %31, %c0_i32_24 : i32
    scf.if %32 {
      %c0_27 = arith.constant 0 : index
      %c0_28 = arith.constant 0 : index
      %38 = vector.load %arg19[%c0_27, %c0_28] : memref<16x128xf32, #tpu.memory_space<vmem>>, vector<16x128xf32>
      %c0_29 = arith.constant 0 : index
      %c0_30 = arith.constant 0 : index
      %39 = vector.load %arg21[%c0_29, %c0_30] : memref<16x128xf32, #tpu.memory_space<vmem>>, vector<16x128xf32>
      %40 = tpu.concatenate %38, %39 in 1 : vector<16x128xf32>, vector<16x128xf32> -> vector<16x256xf32>
      %c0_31 = arith.constant 0 : index
      %c0_32 = arith.constant 0 : index
      %c0_33 = arith.constant 0 : index
      %41 = vector.load %arg11[%c0_31, %c0_32, %c0_33] : memref<1x256x128xf32, #tpu.memory_space<vmem>>, vector<1x256x128xf32>
      %42 = vector.shape_cast %41 : vector<1x256x128xf32> to vector<256x128xf32>
      %cst_34 = arith.constant dense<0.000000e+00> : vector<16x128xf32>
      %43 = tpu.matmul %40, %42, %cst_34 {dimension_numbers = #tpu.dot_dimension_numbers<[1], [0], [0], [1], [0, 0, 1, 1], [], []>} : vector<16x256xf32>, vector<256x128xf32>, vector<16x128xf32> -> vector<16x128xf32>
      %c0_35 = arith.constant 0 : index
      %c0_36 = arith.constant 0 : index
      %c0_37 = arith.constant 0 : index
      %44 = vector.load %arg12[%c0_35, %c0_36, %c0_37] : memref<1x1x128xf32, #tpu.memory_space<vmem>>, vector<1x1x128xf32>
      %45 = vector.shape_cast %44 : vector<1x1x128xf32> to vector<1x128xf32>
      %46 = vector.broadcast %45 : vector<1x128xf32> to vector<16x128xf32>
      %47 = arith.addf %43, %46 : vector<16x128xf32>
      %cst_38 = arith.constant 0.000000e+00 : f32
      %48 = vector.broadcast %cst_38 : f32 to vector<16x128xf32>
      %49 = arith.maximumf %47, %48 : vector<16x128xf32>
      %c0_39 = arith.constant 0 : index
      %c0_40 = arith.constant 0 : index
      %c0_41 = arith.constant 0 : index
      %50 = vector.load %arg13[%c0_39, %c0_40, %c0_41] : memref<1x128x128xf32, #tpu.memory_space<vmem>>, vector<1x128x128xf32>
      %51 = vector.shape_cast %50 : vector<1x128x128xf32> to vector<128x128xf32>
      %cst_42 = arith.constant dense<0.000000e+00> : vector<16x128xf32>
      %52 = tpu.matmul %38, %51, %cst_42 {dimension_numbers = #tpu.dot_dimension_numbers<[1], [0], [0], [1], [0, 0, 1, 1], [], []>} : vector<16x128xf32>, vector<128x128xf32>, vector<16x128xf32> -> vector<16x128xf32>
      %53 = arith.addf %52, %49 : vector<16x128xf32>
      %c0_43 = arith.constant 0 : index
      %c0_44 = arith.constant 0 : index
      %54 = vector.load %arg19[%c0_43, %c0_44] : memref<16x128xf32, #tpu.memory_space<vmem>>, vector<16x128xf32>
      tpu.vector_store %arg19[%c0_43, %c0_44], %53 {strides = array<i32>} : memref<16x128xf32, #tpu.memory_space<vmem>>, vector<16x128xf32>,
    } else {
    }
    %c1_i32 = arith.constant 1 : i32
    %33 = arith.cmpi eq, %arg0, %c1_i32 : i32
    %c0_i32_25 = arith.constant 0 : i32
    %34 = arith.cmpi eq, %arg1, %c0_i32_25 : i32
    %35 = arith.andi %33, %34 : i1
    %36 = arith.extui %35 : i1 to i32
    %c0_i32_26 = arith.constant 0 : i32
    %37 = arith.cmpi ne, %36, %c0_i32_26 : i32
    scf.if %37 {
      %c0_27 = arith.constant 0 : index
      %c0_28 = arith.constant 0 : index
      %38 = vector.load %arg6[%c0_27, %c0_28] : memref<8x16xbf16, #tpu.memory_space<vmem>>, vector<8x16xbf16>
      %c0_29 = arith.constant 0 : index
      %c0_30 = arith.constant 0 : index
      %39 = vector.load %arg19[%c0_29, %c0_30] : memref<16x128xf32, #tpu.memory_space<vmem>>, vector<16x128xf32>
      %40 = arith.truncf %39 : vector<16x128xf32> to vector<16x128xbf16>
      %cst_31 = arith.constant dense<0.000000e+00> : vector<8x128xf32>
      %41 = tpu.matmul %38, %40, %cst_31 {dimension_numbers = #tpu.dot_dimension_numbers<[1], [0], [0], [1], [0, 0, 1, 1], [], []>} : vector<8x16xbf16>, vector<16x128xbf16>, vector<8x128xf32> -> vector<8x128xf32>
      %c0_32 = arith.constant 0 : index
      %c0_33 = arith.constant 0 : index
      %42 = vector.load %arg14[%c0_32, %c0_33] : memref<128x128xf32, #tpu.memory_space<vmem>>, vector<128x128xf32>
      %cst_34 = arith.constant dense<0.000000e+00> : vector<8x128xf32>
      %43 = tpu.matmul %41, %42, %cst_34 {dimension_numbers = #tpu.dot_dimension_numbers<[1], [0], [0], [1], [0, 0, 1, 1], [], []>} : vector<8x128xf32>, vector<128x128xf32>, vector<8x128xf32> -> vector<8x128xf32>
      %c0_35 = arith.constant 0 : index
      %c0_36 = arith.constant 0 : index
      %44 = vector.load %arg15[%c0_35, %c0_36] : memref<1x128xf32, #tpu.memory_space<vmem>>, vector<1x128xf32>
      %45 = vector.broadcast %44 : vector<1x128xf32> to vector<8x128xf32>
      %46 = arith.addf %43, %45 : vector<8x128xf32>
      %cst_37 = arith.constant 0.000000e+00 : f32
      %47 = vector.broadcast %cst_37 : f32 to vector<8x128xf32>
      %48 = arith.maximumf %46, %47 : vector<8x128xf32>
      %c0_38 = arith.constant 0 : index
      %c0_39 = arith.constant 0 : index
      %49 = vector.load %arg16[%c0_38, %c0_39] : memref<128x128xf32, #tpu.memory_space<vmem>>, vector<128x128xf32>
      %cst_40 = arith.constant dense<0.000000e+00> : vector<8x128xf32>
      %50 = tpu.matmul %48, %49, %cst_40 {dimension_numbers = #tpu.dot_dimension_numbers<[1], [0], [0], [1], [0, 0, 1, 1], [], []>} : vector<8x128xf32>, vector<128x128xf32>, vector<8x128xf32> -> vector<8x128xf32>
      %c0_41 = arith.constant 0 : index
      %c0_42 = arith.constant 0 : index
      %51 = vector.load %arg17[%c0_41, %c0_42] : memref<1x128xf32, #tpu.memory_space<vmem>>, vector<1x128xf32>
      %52 = vector.broadcast %51 : vector<1x128xf32> to vector<8x128xf32>
      %53 = arith.addf %50, %52 : vector<8x128xf32>
      %c0_43 = arith.constant 0 : index
      %c0_44 = arith.constant 0 : index
      %54 = vector.load %arg18[%c0_43, %c0_44] : memref<8x128xf32, #tpu.memory_space<vmem>>, vector<8x128xf32>
      tpu.vector_store %arg18[%c0_43, %c0_44], %53 {strides = array<i32>} : memref<8x128xf32, #tpu.memory_space<vmem>>, vector<8x128xf32>,
    } else {
    }
    return
  }
  func.func @transform_0(%arg0: i32, %arg1: i32) -> (i32, i32) {
    %c0_i32 = arith.constant 0 : i32
    %c0_i32_0 = arith.constant 0 : i32
    %c0_i32_1 = arith.constant 0 : i32
    return %c0_i32, %c0_i32_0 : i32, i32
  }
  func.func @transform_1(%arg0: i32, %arg1: i32) -> (i32, i32) {
    %c0_i32 = arith.constant 0 : i32
    %c0_i32_0 = arith.constant 0 : i32
    return %arg1, %c0_i32 : i32, i32
  }
  func.func @transform_2(%arg0: i32, %arg1: i32) -> (i32, i32) {
    %c0_i32 = arith.constant 0 : i32
    %c0_i32_0 = arith.constant 0 : i32
    return %c0_i32, %arg1 : i32, i32
  }
  func.func @transform_3(%arg0: i32, %arg1: i32) -> (i32, i32) {
    %c0_i32 = arith.constant 0 : i32
    %c0_i32_0 = arith.constant 0 : i32
    return %arg1, %c0_i32 : i32, i32
  }
  func.func @transform_4(%arg0: i32, %arg1: i32) -> (i32, i32) {
    %c0_i32 = arith.constant 0 : i32
    %c0_i32_0 = arith.constant 0 : i32
    %c0_i32_1 = arith.constant 0 : i32
    return %c0_i32, %c0_i32_0 : i32, i32
  }
  func.func @transform_5(%arg0: i32, %arg1: i32) -> (i32, i32, i32) {
    %c0_i32 = arith.constant 0 : i32
    %c0_i32_0 = arith.constant 0 : i32
    %c0_i32_1 = arith.constant 0 : i32
    return %arg0, %c0_i32, %c0_i32_0 : i32, i32, i32
  }
  func.func @transform_6(%arg0: i32, %arg1: i32) -> (i32, i32, i32) {
    %c0_i32 = arith.constant 0 : i32
    %c0_i32_0 = arith.constant 0 : i32
    %c0_i32_1 = arith.constant 0 : i32
    return %arg0, %c0_i32, %c0_i32_0 : i32, i32, i32
  }
  func.func @transform_7(%arg0: i32, %arg1: i32) -> (i32, i32, i32) {
    %c0_i32 = arith.constant 0 : i32
    %c0_i32_0 = arith.constant 0 : i32
    %c0_i32_1 = arith.constant 0 : i32
    return %arg0, %c0_i32, %c0_i32_0 : i32, i32, i32
  }
  func.func @transform_8(%arg0: i32, %arg1: i32) -> (i32, i32, i32) {
    %c0_i32 = arith.constant 0 : i32
    %c0_i32_0 = arith.constant 0 : i32
    %c0_i32_1 = arith.constant 0 : i32
    return %arg0, %c0_i32, %c0_i32_0 : i32, i32, i32
  }
  func.func @transform_9(%arg0: i32, %arg1: i32) -> (i32, i32, i32) {
    %c0_i32 = arith.constant 0 : i32
    %c0_i32_0 = arith.constant 0 : i32
    %c0_i32_1 = arith.constant 0 : i32
    return %arg0, %c0_i32, %c0_i32_0 : i32, i32, i32
  }
  func.func @transform_10(%arg0: i32, %arg1: i32) -> (i32, i32, i32) {
    %c0_i32 = arith.constant 0 : i32
    %c0_i32_0 = arith.constant 0 : i32
    %c0_i32_1 = arith.constant 0 : i32
    return %arg0, %c0_i32, %c0_i32_0 : i32, i32, i32
  }
  func.func @transform_11(%arg0: i32, %arg1: i32) -> (i32, i32, i32) {
    %c0_i32 = arith.constant 0 : i32
    %c0_i32_0 = arith.constant 0 : i32
    %c0_i32_1 = arith.constant 0 : i32
    return %arg0, %c0_i32, %c0_i32_0 : i32, i32, i32
  }
  func.func @transform_12(%arg0: i32, %arg1: i32) -> (i32, i32) {
    %c0_i32 = arith.constant 0 : i32
    %c0_i32_0 = arith.constant 0 : i32
    %c0_i32_1 = arith.constant 0 : i32
    return %c0_i32, %c0_i32_0 : i32, i32
  }
  func.func @transform_13(%arg0: i32, %arg1: i32) -> (i32, i32) {
    %c0_i32 = arith.constant 0 : i32
    %c0_i32_0 = arith.constant 0 : i32
    %c0_i32_1 = arith.constant 0 : i32
    return %c0_i32, %c0_i32_0 : i32, i32
  }
  func.func @transform_14(%arg0: i32, %arg1: i32) -> (i32, i32) {
    %c0_i32 = arith.constant 0 : i32
    %c0_i32_0 = arith.constant 0 : i32
    %c0_i32_1 = arith.constant 0 : i32
    return %c0_i32, %c0_i32_0 : i32, i32
  }
  func.func @transform_15(%arg0: i32, %arg1: i32) -> (i32, i32) {
    %c0_i32 = arith.constant 0 : i32
    %c0_i32_0 = arith.constant 0 : i32
    %c0_i32_1 = arith.constant 0 : i32
    return %c0_i32, %c0_i32_0 : i32, i32
  }
  func.func @transform_16(%arg0: i32, %arg1: i32) -> (i32, i32) {
    %c0_i32 = arith.constant 0 : i32
    %c0_i32_0 = arith.constant 0 : i32
    %c0_i32_1 = arith.constant 0 : i32
    return %c0_i32, %c0_i32_0 : i32, i32
  }
}

</mosaic_0001>

<bundles_post_ra>
// kernel: tpu_custom_call.1
= control target key start
LH: loop header
LB: loop body
LE: loop exit
PB: predicated region body
PF: predicated region fallthrough
CT: control target
= control target key end

     0   :  { %s4230_s0 = inlined_call_operand.hbm [shape: f32[16,128], index: 0, kind: input, shape index: {}]   ;;  %s4231_s1 = inlined_call_operand.vmem [shape: bf16[128,32], index: 1, kind: input, shape index: {}]   ;;  %s4232_s2 = inlined_call_operand.hbm [shape: bf16[16,128], index: 2, kind: input, shape index: {}]   ;;  %s4233_s3 = inlined_call_operand.vmem [shape: f32[128,1], index: 3, kind: input, shape index: {}]   ;;  %s4234_s4 = inlined_call_operand.hbm [shape: bf16[8,16], index: 4, kind: input, shape index: {}]   ;;  %s4235_s5 = inlined_call_operand.hbm [shape: f32[2,128,128], index: 5, kind: input, shape index: {}]   ;;  %s4236_s6 = inlined_call_operand.hbm [shape: f32[2,128,128], index: 6, kind: input, shape index: {}]   ;;  %s4237_s7 = inlined_call_operand.vmem [shape: f32[2,1,128], index: 7, kind: input, shape index: {}]   ;;  %s4238_s8 = inlined_call_operand.hbm [shape: f32[2,1,128], index: 8, kind: input, shape index: {}]   ;;  %s4239_s9 = inlined_call_operand.hbm [shape: f32[2,256,128], index: 9, kind: input, shape index: {}]   ;;  %s4240_s10 = inlined_call_operand.hbm [shape: f32[2,1,128], index: 10, kind: input, shape index: {}]   ;;  %s4241_s11 = inlined_call_operand.hbm [shape: f32[2,128,128], index: 11, kind: input, shape index: {}]   ;;  %s4242_s12 = inlined_call_operand.vmem [shape: f32[128,128], index: 12, kind: input, shape index: {}]   ;;  %s4243_s13 = inlined_call_operand.hbm [shape: f32[1,128], index: 13, kind: input, shape index: {}]   ;;  %s4244_s14 = inlined_call_operand.vmem [shape: f32[128,128], index: 14, kind: input, shape index: {}]   ;;  %s4245_s15 = inlined_call_operand.vmem [shape: f32[1,128], index: 15, kind: input, shape index: {}]   ;;  %s4246_s16 = inlined_call_operand.hbm [shape: f32[8,128], index: 16, kind: output, shape index: {}]  }
   0x1   :  { %4283 = sst [smem:[#allocation38_spill]] %s4230_s0 }
   0x2   :  { %4284 = sst [smem:[#allocation39_spill]] %s4231_s1 }
   0x3   :  { %4285 = sst [smem:[#allocation40_spill]] %s4232_s2 }
   0x4   :  { %4286 = sst [smem:[#allocation41_spill]] %s4233_s3 }
   0x5   :  { %4287 = sst [smem:[#allocation42_spill]] %s4235_s5 }
   0x6   :  { %4288 = sst [smem:[#allocation43_spill]] %s4237_s7 }
   0x7   :  { %4289 = sst [smem:[#allocation44_spill]] %s4238_s8 }
   0x8   :  { %4290 = sst [smem:[#allocation45_spill]] %s4240_s10 }
   0x9   :  { %4291 = sst [smem:[#allocation46_spill]] %s4242_s12 }
   0xa   :  { %4292 = sst [smem:[#allocation47_spill]] %s4244_s14 }
   0xb   :  { %4293 = sst [smem:[#allocation48_spill]] %s4245_s15 }
   0xc   :  { %4294 = sst [smem:[#allocation49_spill]] %s4246_s16 }
   0xd   :  { %21 = vsyncpa [#allocation6], 0 }
   0xe   :  { %22 = vsyncpa [#allocation9], 0 }
   0xf   :  { %23 = vsyncpa [#allocation12], 0 }
  0x10   :  { %25 = vsyncpa [#allocation12 + $0x1], 0 }
  0x11   :  { %26 = vsyncpa [#allocation15], 0 }
  0x12   :  { %28 = vsyncpa [#allocation15 + $0x1], 0 }
  0x13   :  { %29 = vsyncpa [#allocation18], 0 }
  0x14   :  { %31 = vsyncpa [#allocation18 + $0x1], 0 }
  0x15   :  { %32 = vsyncpa [#allocation21], 0 }
  0x16   :  { %33 = vsyncpa [#allocation7], 0  ;;  %s3409_s21 = smov 0   ;;  %s3411_s22 = smov 0  }
  0x17   :  { %s3413_s23 = smov 0   ;;  %s3415_s24 = smov 0  }
  0x18   :  { %s3417_s25 = smov 0   ;;  %s3419_s26 = smov 0  }
  0x19 LB: > { %4295 = sst [smem:[#allocation30_spill]] %s3285_s22  ;;  %s3438_s27 = sadd.s32 4294967295, %s3301_s26   ;;  %s3301_s26 = sphi %s3419_s26, %s39_s26   ;;  %s3297_s25 = sphi %s3417_s25, %s4356_s25   ;;  %s3293_s24 = sphi %s3415_s24, %s4355_s24   ;;  %s3289_s23 = sphi %s3413_s23, %s4353_s23   ;;  %s3285_s22 = sphi %s3411_s22, %s4352_s22   ;;  %s3281_s21 = sphi %s3409_s21, %s4351_s21  }
  0x1a   : > { %4296 = sst [smem:[#allocation31_spill]] %s3289_s23  ;;  %p191_p0 = scmp.ne.s32.totalorder %s3285_s22, %s3281_s21 }
  0x1b   : > { %4297 = sst [smem:[#allocation32_spill]] %s3293_s24  ;;  %p4251_p1 = scmp.eq.s32.totalorder %s3438_s27, 0 }
  0x1c   : > { %4298 = sst [smem:[#allocation33_spill]] %s3301_s26  ;;  %p2150_p2 = scmp.ge.s32.totalorder %s3301_s26, 1 }
  0x1d   : > { %4299 = sst [smem:[#allocation34_spill]] %s3438_s27  ;;  %p463_p3 = scmp.lt.s32.totalorder %s3301_s26, 3 }
  0x1e   : > { %p3446_p4 = por %p4251_p1, %p191_p0  ;;  %s3303_s30 = smov [#allocation8]  }
  0x1f   : > { %p3450_p5 = pnand %p2150_p2, %p463_p3  ;;  %s499_s0 = sshll.u32 %s3303_s30, 4  ;;  %s500_s0 = int_to_ptr.vmem [resolvable:$true] %s499_s0 }
  0x20   : > { %s4300_s28 = scalar_select %p3446_p4, 1, 0 }
  0x21   : > { %s4302_s29 = scalar_select %p3450_p5, 1, 0 }
  0x22   : > { %4301 = sst [smem:[#allocation35_spill]] %s4300_s28  ;;  %p2792_p6 = pneg %p3450_p5 }
  0x23   : > { %s51_s18 = sadd.s32 1, %s3297_s25  ;;  %s4304_s2 = sld [smem:[#allocation40_spill]] }
  0x24   : > { %p3458_p7 = pnand %p2792_p6, %p4251_p1 }
  0x26   : > { %s4303_s17 = scalar_select %p3458_p7, 1, 0 }
  0x27   : > { %p3471_p9 = pneg %p3458_p7 }
  0x29   : > { %s2909_s21 = scalar_lea.hbm %s4304_s2, 128 }
  0x2a   : > { %p2910_p8 = scmp.ne.s32.totalorder %s4304_s2, %s2909_s21  ;;  %p2916_p12 = scmp.lt.u32.totalorder %s2909_s21, %s4304_s2 }
  0x2b   : > { %s4305_s30 = scalar_select %p3471_p9, 1, 0 }
  0x2c   : > { %p2912_p10 = pnand %p3471_p9, %p2910_p8 }
  0x2e   : > { %p2913_p11 = pneg %p2912_p10 }
  0x30   : > { %p2918_p13 = pnand %p2916_p12, %p2913_p11 }
  0x32   : > { %2921 = shalt.err (!%p2918_p13)
}
  0x33   : > { %s2922_s19 = scalar_lea.vmem %s500_s0, 128  ;;  %p2930_p6 = scmp.lt.s32.totalorder %s500_s0, %s500_s0 }
  0x34   : > { %p2923_p0 = scmp.ne.s32.totalorder %s500_s0, %s2922_s19  ;;  %p2931_p1 = scmp.lt.s32.totalorder %s2922_s19, %s2922_s19 }
  0x36   : > { %p2925_p2 = pnand %p2923_p0, %p3471_p9  ;;  %p2932_p4 = por %p2931_p1, %p2930_p6 }
  0x38   : > { %p2926_p3 = pneg %p2925_p2 }
  0x3a   : > { %p2933_p5 = pnand %p2932_p4, %p2926_p3 }
  0x3c   : > { %2936 = shalt.err (!%p2933_p5)
}
  0x3d   : > { %s3304_s15 = smov 64   ;;  %s3305_s12 = smov 4  }
  0x3e   : > { %2798 = dma.hbm_to_vmem [thread:$0]  (!%p3458_p7), %s4304_s2, 128, %s500_s0, [#allocation9], %s3304_s15, %s3304_s15, %s3305_s12  }
  0x3f   : > { %p53_p1 = scmp.ge.s32.totalorder %s51_s18, 2  ;;  %s178_s20 = sadd.s32 1, %s3289_s23 }
  0x40   : > { %p185_p4 = scmp.ne.s32.totalorder %s3289_s23, %s3285_s22  ;;  %p186_p5 = scmp.eq.s32.totalorder %s3301_s26, 0 }
  0x41   : > { %s4358_s18 = smov (%p53_p1, %s51_s18), 0  ;;  %p2828_p11 = scmp.lt.s32.totalorder %s3301_s26, 2 }
  0x42   : > { %4306 = sst [smem:[#allocation36_spill]] %s4358_s18  ;;  %p3493_p8 = por %p186_p5, %p185_p4 }
  0x43   : > { %s175_s19 = ssub.s32 %s3297_s25, %s4358_s18  ;;  %s3501_s3 = sand.u32 1, %s3301_s26  }
  0x44   : > { %p176_p10 = scmp.eq.s32.totalorder %s175_s19, 0  ;;  %s3504_s0 = sand.u32 1, %s3289_s23  }
  0x45   : > { %s3510_s12 = sshll.u32 %s3504_s0, 7  ;;  %s3513_s14 = sshll.u32 %s3297_s25, 11 }
  0x46   : > { %s3507_s15 = scalar_select %p176_p10, %s3289_s23, %s178_s20  }
  0x47   : > { %s4309_s5 = sld [smem:[#allocation42_spill]]  ;;  %s557_s19 = scalar_lea.vmem [#allocation11], %s3510_s12 }
  0x48   : > { %4308 = sst [smem:[#allocation37_spill]] %s3507_s15  ;;  %s564_s26 = sshll.u32 %s557_s19, 4  ;;  %s3522_s26 = int_to_ptr.vmem [resolvable:$true] %s564_s26 }
  0x49   : > { %p3526_p12 = pnand %p2828_p11, %p3493_p8  ;;  %s4268_s23 = scalar_lea.sflag [#allocation12], %s3501_s3 }
  0x4b   : > { %s4310_s20 = scalar_select %p3526_p12, 1, 0 }
  0x4c   : > { %p3536_p0 = pneg %p3526_p12 }
  0x4d   : > { %s3519_s18 = scalar_lea.hbm %s4309_s5, %s3513_s14  ;;  %s2942_s19 = scalar_lea.hbm %s4309_s5, 4096 }
  0x4e   : > { %s2937_s1 = scalar_lea.hbm %s3519_s18, 2048  ;;  %p2943_p6 = scmp.lt.u32.totalorder %s3519_s18, %s4309_s5 }
  0x4f   : > { %p2938_p13 = scmp.ne.s32.totalorder %s3519_s18, %s2937_s1  ;;  %p2944_p1 = scmp.lt.u32.totalorder %s2942_s19, %s2937_s1 }
  0x50   : > { %s4311_s2 = scalar_select %p3536_p0, 1, 0 }
  0x51   : > { %p2940_p2 = pnand %p3536_p0, %p2938_p13  ;;  %p2945_p4 = por %p2944_p1, %p2943_p6 }
  0x52   : > { %p2946_p5 = scmp.lt.u32.totalorder %s2937_s1, %s3519_s18 }
  0x53   : > { %p2941_p3 = pneg %p2940_p2 }
  0x54   : > { %p2947_p8 = por %p2946_p5, %p2945_p4 }
  0x56   : > { %p2948_p10 = pnand %p2947_p8, %p2941_p3 }
  0x58   : > { %2951 = shalt.err (!%p2948_p10)
}
  0x59   : > { %s2952_s15 = scalar_lea.vmem %s3522_s26, 2048  ;;  %s3306_s16 = smov [#allocation11]  }
  0x5a   : > { %p2953_p11 = scmp.ne.s32.totalorder %s3522_s26, %s2952_s15  ;;  %s2957_s21 = sshll.u32 %s3306_s16, 4  ;;  %s2958_s21 = int_to_ptr.vmem [resolvable:$false] %s2957_s21 }
  0x5b   : > { %s2959_s7 = scalar_lea.vmem %s2958_s21, 4096  ;;  %p2960_p7 = scmp.lt.s32.totalorder %s3522_s26, %s2958_s21 }
  0x5c   : > { %p2955_p13 = pnand %p2953_p11, %p3536_p0  ;;  %p2961_p9 = scmp.lt.s32.totalorder %s2959_s7, %s2952_s15 }
  0x5e   : > { %p2956_p2 = pneg %p2955_p13  ;;  %p2962_p6 = por %p2961_p9, %p2960_p7 }
  0x60   : > { %p2963_p1 = pnand %p2962_p6, %p2956_p2 }
  0x62   : > { %2966 = shalt.err (!%p2963_p1)
}
  0x63   : > { %s4269_s1 = smov 128   ;;  %s4274_s24 = smov 8  }
  0x64   : > { %2808 = dma.hbm_to_vmem [thread:$0]  (!%p3526_p12), %s3519_s18, 2048, %s3522_s26, %s4268_s23, %s4269_s1, %s4269_s1, %s4274_s24  }
  0x65   : > { %s4312_s15 = sshll.u32 %s3297_s25, 4  ;;  %s4313_s8 = sld [smem:[#allocation44_spill]] }
  0x66   : > { %s604_s7 = scalar_lea.vmem [#allocation14], %s3504_s0  ;;  %s4273_s28 = scalar_lea.sflag [#allocation15], %s3501_s3 }
  0x67   : > { %s611_s5 = sshll.u32 %s604_s7, 4  ;;  %s612_s5 = int_to_ptr.vmem [resolvable:$true] %s611_s5 }
  0x6b   : > { %s3569_s21 = scalar_lea.hbm %s4313_s8, %s4312_s15  ;;  %s2972_s23 = scalar_lea.hbm %s4313_s8, 32 }
  0x6c   : > { %s2967_s22 = scalar_lea.hbm %s3569_s21, 16  ;;  %p2973_p4 = scmp.lt.u32.totalorder %s3569_s21, %s4313_s8 }
  0x6d   : > { %p2968_p7 = scmp.ne.s32.totalorder %s3569_s21, %s2967_s22  ;;  %p2974_p5 = scmp.lt.u32.totalorder %s2972_s23, %s2967_s22 }
  0x6e   : > { %p2976_p10 = scmp.lt.u32.totalorder %s2967_s22, %s3569_s21 }
  0x6f   : > { %p2970_p9 = pnand %p2968_p7, %p3536_p0  ;;  %p2975_p8 = por %p2974_p5, %p2973_p4 }
  0x71   : > { %p2971_p3 = pneg %p2970_p9  ;;  %p2977_p11 = por %p2976_p10, %p2975_p8 }
  0x73   : > { %p2978_p13 = pnand %p2977_p11, %p2971_p3 }
  0x75   : > { %2981 = shalt.err (!%p2978_p13)
}
  0x76   : > { %s2982_s16 = scalar_lea.vmem %s612_s5, 16  ;;  %s3309_s7 = smov [#allocation14]  }
  0x77   : > { %p2983_p2 = scmp.ne.s32.totalorder %s612_s5, %s2982_s16  ;;  %s2987_s1 = sshll.u32 %s3309_s7, 4  ;;  %s2988_s1 = int_to_ptr.vmem [resolvable:$false] %s2987_s1 }
  0x78   : > { %s2989_s26 = scalar_lea.vmem %s2988_s1, 32  ;;  %p2990_p7 = scmp.lt.s32.totalorder %s612_s5, %s2988_s1 }
  0x79   : > { %p2985_p6 = pnand %p2983_p2, %p3536_p0  ;;  %p2991_p9 = scmp.lt.s32.totalorder %s2989_s26, %s2982_s16 }
  0x7b   : > { %p2986_p1 = pneg %p2985_p6  ;;  %p2992_p12 = por %p2991_p9, %p2990_p7 }
  0x7d   : > { %p2993_p4 = pnand %p2992_p12, %p2986_p1 }
  0x7f   : > { %2996 = shalt.err (!%p2993_p4)
}
  0x80   : > { %p4314_p5 = scmp.ne.s32.totalorder %s4310_s20, 0  ;;  %s4315_s22 = sshll.u32 %s3297_s25, 4 }
  0x81   : > { %s4316_s10 = sld [smem:[#allocation45_spill]]  ;;  %s642_s1 = scalar_lea.vmem [#allocation17], %s3504_s0 }
  0x82   : > { %2814 = dma.hbm_to_vmem [thread:$0]  (!%p4314_p5), %s3569_s21, 16, %s612_s5, %s4273_s28  }
  0x83   : > { %s649_s15 = sshll.u32 %s642_s1, 4  ;;  %s4276_s16 = scalar_lea.sflag [#allocation18], %s3501_s3  ;;  %s650_s15 = int_to_ptr.vmem [resolvable:$true] %s649_s15 }
  0x87   : > { %s3597_s19 = scalar_lea.hbm %s4316_s10, %s4315_s22  ;;  %s3002_s26 = scalar_lea.hbm %s4316_s10, 32 }
  0x88   : > { %s2997_s7 = scalar_lea.hbm %s3597_s19, 16  ;;  %p3003_p10 = scmp.lt.u32.totalorder %s3597_s19, %s4316_s10 }
  0x89   : > { %p2998_p12 = scmp.ne.s32.totalorder %s3597_s19, %s2997_s7  ;;  %p3004_p11 = scmp.lt.u32.totalorder %s3002_s26, %s2997_s7 }
  0x8a   : > { %p3006_p2 = scmp.lt.u32.totalorder %s2997_s7, %s3597_s19 }
  0x8b   : > { %p3000_p3 = pnand %p2998_p12, %p3536_p0  ;;  %p3005_p13 = por %p3004_p11, %p3003_p10 }
  0x8d   : > { %p3001_p8 = pneg %p3000_p3  ;;  %p3007_p6 = por %p3006_p2, %p3005_p13 }
  0x8f   : > { %p3008_p1 = pnand %p3007_p6, %p3001_p8 }
  0x91   : > { %3011 = shalt.err (!%p3008_p1)
}
  0x92   : > { %s3012_s18 = scalar_lea.vmem %s650_s15, 16  ;;  %s3310_s1 = smov [#allocation17]  }
  0x93   : > { %p3013_p7 = scmp.ne.s32.totalorder %s650_s15, %s3012_s18  ;;  %s3017_s28 = sshll.u32 %s3310_s1, 4  ;;  %s3018_s28 = int_to_ptr.vmem [resolvable:$false] %s3017_s28 }
  0x94   : > { %s3019_s5 = scalar_lea.vmem %s3018_s28, 32  ;;  %p3020_p12 = scmp.lt.s32.totalorder %s650_s15, %s3018_s28 }
  0x95   : > { %p3015_p9 = pnand %p3013_p7, %p3536_p0  ;;  %p3021_p3 = scmp.lt.s32.totalorder %s3019_s5, %s3012_s18 }
  0x97   : > { %p3016_p4 = pneg %p3015_p9  ;;  %p3022_p5 = por %p3021_p3, %p3020_p12 }
  0x99   : > { %p3023_p10 = pnand %p3022_p5, %p3016_p4 }
  0x9b   : > { %3026 = shalt.err (!%p3023_p10)
}
  0x9c   : > { %p4317_p11 = scmp.ne.s32.totalorder %s4310_s20, 0  ;;  %s3311_s7 = smov [#allocation5]  }
  0x9d   : > { %s475_s21 = sshll.u32 %s3311_s7, 4  ;;  %s3312_s26 = smov [#allocation10]   ;;  %s476_s21 = int_to_ptr.vmem [resolvable:$true] %s475_s21 }
  0x9e   : > { %2820 = dma.hbm_to_vmem [thread:$0]  (!%p4317_p11), %s3597_s19, 16, %s650_s15, %s4276_s16  }
  0x9f   : > { %s522_s23 = sshll.u32 %s3312_s26, 4  ;;  %s4318_s18 = sld [smem:[#allocation38_spill]]  ;;  %s3620_s23 = int_to_ptr.vmem [resolvable:$true] %s522_s23 }
  0xa0   : > { %p4319_p8 = scmp.ne.s32.totalorder %s4305_s30, 0 }
  0xa5   : > { %s3027_s1 = scalar_lea.hbm %s4318_s18, 256 }
  0xa6   : > { %p3028_p5 = scmp.ne.s32.totalorder %s4318_s18, %s3027_s1  ;;  %p3034_p6 = scmp.lt.u32.totalorder %s3027_s1, %s4318_s18 }
  0xa8   : > { %p3030_p13 = pnand %p3028_p5, %p4319_p8 }
  0xaa   : > { %p3031_p2 = pneg %p3030_p13 }
  0xac   : > { %p3036_p1 = pnand %p3034_p6, %p3031_p2 }
  0xae   : > { %3039 = shalt.err (!%p3036_p1)
}
  0xaf   : > { %s3040_s15 = scalar_lea.vmem %s476_s21, 256  ;;  %p3048_p12 = scmp.lt.s32.totalorder %s476_s21, %s476_s21 }
  0xb0   : > { %p3041_p7 = scmp.ne.s32.totalorder %s476_s21, %s3040_s15  ;;  %p3049_p3 = scmp.lt.s32.totalorder %s3040_s15, %s3040_s15 }
  0xb2   : > { %p3043_p9 = pnand %p3041_p7, %p4319_p8  ;;  %p3050_p10 = por %p3049_p3, %p3048_p12 }
  0xb4   : > { %p3044_p4 = pneg %p3043_p9 }
  0xb6   : > { %p3051_p11 = pnand %p3050_p10, %p3044_p4 }
  0xb8   : > { %3054 = shalt.err (!%p3051_p11)
}
  0xb9   : > { %p4320_p5 = scmp.ne.s32.totalorder %s4303_s17, 0  ;;  %s4321_s24 = smov 8  }
  0xba   : > { %s4322_s7 = smov 128   ;;  %s3055_s1 = scalar_lea.hbm %s4234_s4, 64 }
  0xbb   : > { %2795 = dma.hbm_to_vmem [thread:$0]  (!%p4320_p5), %s4318_s18, 256, %s476_s21, [#allocation6], %s4322_s7, %s4322_s7, %s4321_s24  }
  0xbc   : > { %p3056_p13 = scmp.ne.s32.totalorder %s4234_s4, %s3055_s1  ;;  %p3062_p6 = scmp.lt.u32.totalorder %s3055_s1, %s4234_s4 }
  0xbe   : > { %p3058_p11 = pnand %p3056_p13, %p4319_p8 }
  0xc0   : > { %p3059_p2 = pneg %p3058_p11 }
  0xc2   : > { %p3064_p1 = pnand %p3062_p6, %p3059_p2 }
  0xc4   : > { %3067 = shalt.err (!%p3064_p1)
}
  0xc5   : > { %s3068_s21 = scalar_lea.vmem %s3620_s23, 64  ;;  %p3076_p12 = scmp.lt.s32.totalorder %s3620_s23, %s3620_s23 }
  0xc6   : > { %p3069_p7 = scmp.ne.s32.totalorder %s3620_s23, %s3068_s21  ;;  %p3077_p3 = scmp.lt.s32.totalorder %s3068_s21, %s3068_s21 }
  0xc8   : > { %p3071_p9 = pnand %p3069_p7, %p4319_p8  ;;  %p3078_p10 = por %p3077_p3, %p3076_p12 }
  0xca   : > { %p3072_p4 = pneg %p3071_p9 }
  0xcc   : > { %p3079_p13 = pnand %p3078_p10, %p3072_p4 }
  0xce   : > { %3082 = shalt.err (!%p3079_p13)
}
  0xcf   : > { %2801 = dma.hbm_to_vmem [thread:$0]  (!%p4320_p5), %s4234_s4, 64, %s3620_s23, [#allocation9]  }
  0xd0   : > { %s3313_s26 = smov [#allocation20]   ;;  %s3670_s5 = scalar_lea.hbm %s4236_s6, %s3513_s14 }
  0xd1   : > { %s536_s22 = sshll.u32 %s3313_s26, 4  ;;  %s578_s19 = scalar_lea.vmem [#allocation13], %s3510_s12  ;;  %s537_s22 = int_to_ptr.vmem [resolvable:$true] %s536_s22 }
  0xd2   : > { %s585_s15 = sshll.u32 %s578_s19, 4  ;;  %s3083_s18 = scalar_lea.hbm %s4243_s13, 16  ;;  %s3691_s15 = int_to_ptr.vmem [resolvable:$true] %s585_s15 }
  0xd3   : > { %p3084_p11 = scmp.ne.s32.totalorder %s4243_s13, %s3083_s18  ;;  %p3090_p1 = scmp.lt.u32.totalorder %s3083_s18, %s4243_s13 }
  0xd5   : > { %p3086_p2 = pnand %p3084_p11, %p4319_p8 }
  0xd7   : > { %p3087_p6 = pneg %p3086_p2 }
  0xd9   : > { %p3092_p7 = pnand %p3090_p1, %p3087_p6 }
  0xdb   : > { %3095 = shalt.err (!%p3092_p7)
}
  0xdc   : > { %s3096_s26 = scalar_lea.vmem %s537_s22, 16  ;;  %s3103_s10 = scalar_lea.vmem %s537_s22, 32 }
  0xdd   : > { %p3097_p9 = scmp.ne.s32.totalorder %s537_s22, %s3096_s26  ;;  %p3104_p3 = scmp.lt.s32.totalorder %s537_s22, %s537_s22 }
  0xde   : > { %p3105_p10 = scmp.lt.s32.totalorder %s3103_s10, %s3096_s26 }
  0xdf   : > { %p3099_p4 = pnand %p3097_p9, %p4319_p8 }
  0xe0   : > { %p3106_p13 = por %p3105_p10, %p3104_p3 }
  0xe1   : > { %p3100_p12 = pneg %p3099_p4 }
  0xe3   : > { %p3107_p0 = pnand %p3106_p13, %p3100_p12 }
  0xe5   : > { %3110 = shalt.err (!%p3107_p0)
}
  0xe6   : > { %2804 = dma.hbm_to_vmem [thread:$0]  (!%p4320_p5), %s4243_s13, 16, %s537_s22, [#allocation21]  }
  0xe7   : > { %s2165_s30 = sshll.u32 %s3504_s0, 8  ;;  %s3111_s18 = scalar_lea.hbm %s3670_s5, 2048 }
  0xe8   : > { %p3112_p8 = scmp.ne.s32.totalorder %s3670_s5, %s3111_s18  ;;  %p4323_p11 = scmp.ne.s32.totalorder %s4311_s2, 0 }
  0xe9   : > { %s3116_s19 = scalar_lea.hbm %s4236_s6, 4096  ;;  %p3117_p6 = scmp.lt.u32.totalorder %s3670_s5, %s4236_s6 }
  0xea   : > { %p3114_p2 = pnand %p3112_p8, %p4323_p11  ;;  %p3118_p1 = scmp.lt.u32.totalorder %s3116_s19, %s3111_s18 }
  0xeb   : > { %p3120_p9 = scmp.lt.u32.totalorder %s3111_s18, %s3670_s5 }
  0xec   : > { %p3115_p0 = pneg %p3114_p2  ;;  %p3119_p7 = por %p3118_p1, %p3117_p6 }
  0xee   : > { %p3121_p5 = por %p3120_p9, %p3119_p7 }
  0xf0   : > { %p3122_p4 = pnand %p3121_p5, %p3115_p0 }
  0xf2   : > { %3125 = shalt.err (!%p3122_p4)
}
  0xf3   : > { %s3126_s22 = scalar_lea.vmem %s3691_s15, 2048  ;;  %s3314_s23 = smov [#allocation13]  }
  0xf4   : > { %p3127_p12 = scmp.ne.s32.totalorder %s3691_s15, %s3126_s22  ;;  %s3131_s8 = sshll.u32 %s3314_s23, 4  ;;  %s3132_s8 = int_to_ptr.vmem [resolvable:$false] %s3131_s8 }
  0xf5   : > { %s3133_s26 = scalar_lea.vmem %s3132_s8, 4096  ;;  %p3134_p13 = scmp.lt.s32.totalorder %s3691_s15, %s3132_s8 }
  0xf6   : > { %p3129_p3 = pnand %p3127_p12, %p4323_p11  ;;  %p3135_p8 = scmp.lt.s32.totalorder %s3133_s26, %s3126_s22 }
  0xf8   : > { %p3130_p10 = pneg %p3129_p3  ;;  %p3136_p2 = por %p3135_p8, %p3134_p13 }
  0xfa   : > { %p3137_p6 = pnand %p3136_p2, %p3130_p10 }
  0xfc   : > { %3140 = shalt.err (!%p3137_p6)
}
  0xfd   : > { %p4324_p0 = scmp.ne.s32.totalorder %s4310_s20, 0  ;;  %s4325_s10 = scalar_lea.sflag [#allocation12], %s3501_s3 }
  0xfe   : > { %s2212_s27 = sshll.u32 %s3297_s25, 12  ;;  %s622_s17 = scalar_lea.vmem [#allocation16], %s2165_s30 }
  0xff   : > { %2811 = dma.hbm_to_vmem [thread:$0]  (!%p4324_p0), %s3670_s5, 2048, %s3691_s15, %s4325_s10, %s4322_s7, %s4322_s7, %s4321_s24  }
 0x100   : > { %s3724_s1 = scalar_lea.hbm %s4239_s9, %s2212_s27  ;;  %s629_s19 = sshll.u32 %s622_s17, 4  ;;  %s3728_s19 = int_to_ptr.vmem [resolvable:$true] %s629_s19 }
 0x101   : > { %s3141_s21 = scalar_lea.hbm %s3724_s1, 4096  ;;  %s3146_s16 = scalar_lea.hbm %s4239_s9, 8192 }
 0x102   : > { %p3142_p1 = scmp.ne.s32.totalorder %s3724_s1, %s3141_s21  ;;  %p3147_p5 = scmp.lt.u32.totalorder %s3724_s1, %s4239_s9 }
 0x103   : > { %p3148_p4 = scmp.lt.u32.totalorder %s3146_s16, %s3141_s21  ;;  %p3150_p3 = scmp.lt.u32.totalorder %s3141_s21, %s3724_s1 }
 0x104   : > { %p3144_p7 = pnand %p3142_p1, %p4323_p11 }
 0x105   : > { %p3149_p12 = por %p3148_p4, %p3147_p5 }
 0x106   : > { %p3145_p9 = pneg %p3144_p7 }
 0x107   : > { %p3151_p10 = por %p3150_p3, %p3149_p12 }
 0x109   : > { %p3152_p13 = pnand %p3151_p10, %p3145_p9 }
 0x10b   : > { %3155 = shalt.err (!%p3152_p13)
}
 0x10c   : > { %s3156_s0 = scalar_lea.vmem %s3728_s19, 4096  ;;  %s3315_s30 = smov [#allocation16]  }
 0x10d   : > { %p3157_p8 = scmp.ne.s32.totalorder %s3728_s19, %s3156_s0  ;;  %s3161_s8 = sshll.u32 %s3315_s30, 4  ;;  %s3162_s8 = int_to_ptr.vmem [resolvable:$false] %s3161_s8 }
 0x10e   : > { %s3163_s26 = scalar_lea.vmem %s3162_s8, 8192  ;;  %p3164_p1 = scmp.lt.s32.totalorder %s3728_s19, %s3162_s8 }
 0x10f   : > { %p3159_p2 = pnand %p3157_p8, %p4323_p11  ;;  %p3165_p7 = scmp.lt.s32.totalorder %s3163_s26, %s3156_s0 }
 0x111   : > { %p3160_p6 = pneg %p3159_p2  ;;  %p3166_p5 = por %p3165_p7, %p3164_p1 }
 0x113   : > { %p3167_p4 = pnand %p3166_p5, %p3160_p6 }
 0x115   : > { %3170 = shalt.err (!%p3167_p4)
}
 0x116   : > { %s4326_s10 = scalar_lea.sflag [#allocation15], %s3501_s3  ;;  %s3760_s18 = scalar_lea.hbm %s4241_s11, %s3513_s14 }
 0x117   : > { %2817 = dma.hbm_to_vmem [thread:$0]  (!%p4324_p0), %s3724_s1, 4096, %s3728_s19, %s4326_s10, %s4322_s7, %s4322_s7, %s4321_s24  }
 0x118   : > { %s660_s17 = scalar_lea.vmem [#allocation19], %s3510_s12  ;;  %s3171_s5 = scalar_lea.hbm %s3760_s18, 2048 }
 0x119   : > { %s667_s21 = sshll.u32 %s660_s17, 4  ;;  %p3172_p9 = scmp.ne.s32.totalorder %s3760_s18, %s3171_s5  ;;  %s3763_s21 = int_to_ptr.vmem [resolvable:$true] %s667_s21 }
 0x11a   : > { %s3176_s19 = scalar_lea.hbm %s4241_s11, 4096  ;;  %p3177_p10 = scmp.lt.u32.totalorder %s3760_s18, %s4241_s11 }
 0x11b   : > { %p3174_p12 = pnand %p3172_p9, %p4323_p11  ;;  %p3178_p13 = scmp.lt.u32.totalorder %s3176_s19, %s3171_s5 }
 0x11c   : > { %p3180_p2 = scmp.lt.u32.totalorder %s3171_s5, %s3760_s18 }
 0x11d   : > { %p3175_p3 = pneg %p3174_p12  ;;  %p3179_p8 = por %p3178_p13, %p3177_p10 }
 0x11f   : > { %p3181_p6 = por %p3180_p2, %p3179_p8 }
 0x121   : > { %p3182_p1 = pnand %p3181_p6, %p3175_p3 }
 0x123   : > { %3185 = shalt.err (!%p3182_p1)
}
 0x124   : > { %s3186_s12 = scalar_lea.vmem %s3763_s21, 2048  ;;  %s3316_s22 = smov [#allocation19]  }
 0x125   : > { %p3187_p7 = scmp.ne.s32.totalorder %s3763_s21, %s3186_s12  ;;  %s3191_s23 = sshll.u32 %s3316_s22, 4  ;;  %s3192_s23 = int_to_ptr.vmem [resolvable:$false] %s3191_s23 }
 0x126   : > { %s3193_s0 = scalar_lea.vmem %s3192_s23, 4096  ;;  %p3194_p9 = scmp.lt.s32.totalorder %s3763_s21, %s3192_s23 }
 0x127   : > { %p3189_p5 = pnand %p3187_p7, %p4323_p11  ;;  %p3195_p12 = scmp.lt.s32.totalorder %s3193_s0, %s3186_s12 }
 0x129   : > { %p3190_p4 = pneg %p3189_p5  ;;  %p3196_p10 = por %p3195_p12, %p3194_p9 }
 0x12b   : > { %p3197_p13 = pnand %p3196_p10, %p3190_p4 }
 0x12d   : > { %3200 = shalt.err (!%p3197_p13)
}
 0x12e   : > { %s4327_s30 = scalar_lea.sflag [#allocation18], %s3501_s3  ;;  %p4328_p11 = scmp.ne.s32.totalorder %s4302_s29, 0 }
 0x12f   : > { %2823 = dma.hbm_to_vmem [thread:$0]  (!%p4324_p0), %s3760_s18, 2048, %s3763_s21, %s4327_s30, %s4322_s7, %s4322_s7, %s4321_s24  }
 0x130   : > { %679 = sbr.rel (%p4328_p11) target bundleno = 1990 (0x7c6), region = 84  ;;  %s4329_s2 = sld [smem:[#allocation34_spill]] (!%p4328_p11) }
 0x136   : > { %p4330_p3 = scmp.eq.s32.totalorder (!%p4328_p11), %s4329_s2, 0 }
 0x138   : > { %3252 = dma.done.wait (%p4330_p3), [#allocation6], 256   ;;  %p4331_p8 = pmov %p4330_p3 }
 0x139   : > { %p4332_p2 = pmov %p4330_p3 }
 0x13a   : > { %3254 = vsyncadd (%p4331_p8), [#allocation6], 4294967040 }
 0x13b   : > { %3256 = dma.done.wait (%p4332_p2), [#allocation9], 192   ;;  %p4333_p6 = pmov %p4332_p2 }
 0x13c   : > { %s4334_s3 = sld [smem:[#allocation30_spill]]  ;;  %s4335_s20 = sld [smem:[#allocation35_spill]] }
 0x13d   : > { %3258 = vsyncadd (%p4333_p6), [#allocation9], 4294967104  ;;  %s693_s8 = sand.u32 1, %s4329_s2  }
 0x13e   : > { %s694_s7 = scalar_lea.sflag [#allocation12], %s693_s8 }
 0x142   : > { %s3803_s24 = sand.u32 1, %s4334_s3   ;;  %p4336_p0 = scmp.ne.s32.totalorder %s4335_s20, 0 }
 0x143   : > { %s2176_s29 = sshll.u32 %s3803_s24, 7 }
 0x144   : > { %s3806_s26 = scalar_lea.vmem [#allocation11], %s2176_s29 }
 0x145   : > { %3260 = dma.done.wait (%p4336_p0), %s694_s7, 4096  }
 0x146   : > { %3262 = vsyncadd (%p4336_p0), %s694_s7, 4294963200  ;;  %s3812_s10 = scalar_lea.vmem [#allocation13], %s2176_s29  ;;  %s712_s27 = scalar_lea.sflag [#allocation15], %s693_s8 }
 0x147   : > { %s714_s28 = scalar_lea.vmem [#allocation14], %s3803_s24 }
 0x148   : > { %3264 = dma.done.wait (%p4336_p0), %s712_s27, 4112  }
 0x149   : > { %3266 = vsyncadd (%p4336_p0), %s712_s27, 4294963184  ;;  %s2178_s18 = sshll.u32 %s3803_s24, 8  ;;  %s729_s21 = scalar_lea.sflag [#allocation18], %s693_s8 }
 0x14a   : > { %s3820_s17 = scalar_lea.vmem [#allocation16], %s2178_s18  ;;  %s731_s5 = scalar_lea.vmem [#allocation17], %s3803_s24 }
 0x14b   : > { %3268 = dma.done.wait (%p4336_p0), %s729_s21, 2064  }
 0x14c   : > { %3270 = vsyncadd (%p4336_p0), %s729_s21, 4294965232  ;;  %s3827_s15 = scalar_lea.vmem [#allocation19], %s2176_s29  ;;  %p4337_p1 = pmov %p4332_p2 }
 0x14e   : > { %3272 = dma.done.wait (%p4337_p1), [#allocation21], 16   ;;  %p4338_p7 = pmov %p4337_p1 }
 0x14f   : > { %s4339_s1 = sld [smem:[#allocation32_spill]]  ;;  %s4340_s14 = sld [smem:[#allocation43_spill]] }
 0x150   : > { %3274 = vsyncadd (%p4338_p7), [#allocation21], 4294967280 }
 0x155   : > { %p836_p5 = scmp.lt.s32.totalorder %s4339_s1, 1  ;;  %p840_p4 = scmp.eq.s32.totalorder %s4339_s1, 0 }
 0x156   : > { %v846_v0 = vld [vmem:[#allocation5] sm:$0xff] (%p840_p4)  ;;  %v847_v1 = vld [vmem:[#allocation5 + $0x8] sm:$0xff] (%p840_p4) }
 0x157   : > { %s4360_s1 = smov (!%p836_p5, %s4339_s1), 1  ;;  %845 = sbr.rel (!%p840_p4) target bundleno = 350 (0x15e), region = 128 }
 0x158   : > { %s838_s12 = scalar_lea.vmem %s4340_s14, %s4360_s1  ;;  %848 = vst [vmem:[#allocation2] sm:$0xff] (%p840_p4), %v846_v0  ;;  %849 = vst [vmem:[#allocation2 + $0x8] sm:$0xff] (%p840_p4), %v847_v1 }
 0x15e PF: > { %v855_v2 = vld [vmem:[%s3806_s26] sm:$0xff]  ;;  %v856_v3 = vld [vmem:[%s3806_s26 + $0x8] sm:$0xff]  ;;  %v857_v7 = vld [vmem:[%s3806_s26 + $0x10] sm:$0xff]  ;;  %s4341_s0 = sld [smem:[#allocation39_spill]]  ;;  %vm1220_vm0 = vcmask 261120   ;;  %s4342_s3 = sld [smem:[#allocation41_spill]] }
 0x15f   : > { %v946_v4 = vld [vmem:[%s3812_s10] sm:$0xff]  ;;  %v2584_v5 = vpack.c.bf16 %v856_v3, %v855_v2  ;;  %v947_v6 = vld [vmem:[%s3812_s10 + $0x8] sm:$0xff]  ;;  %v858_v8 = vld [vmem:[%s3806_s26 + $0x18] sm:$0xff]  ;;  %v3317_v55 = vmov 0   ;;  %vm3319_vm1 = vmmov 0  }
 0x160   : > { %v2616_v9 = vpack.c.bf16 %v947_v6, %v946_v4  ;;  %v2588_v10 = vpack.c.bf16 %v858_v8, %v857_v7  ;;  %v948_v11 = vld [vmem:[%s3812_s10 + $0x10] sm:$0xff]  ;;  %v949_v12 = vld [vmem:[%s3812_s10 + $0x18] sm:$0xff]  ;;  %v859_v13 = vld [vmem:[%s3806_s26 + $0x20] sm:$0xff]  ;;  %2898 = vset.pattern.permute.xlu0 %v3317_v55  ;;  %2899 = vset.pattern.permute.xlu1 %v3317_v55 }
 0x161   : > { %2585 = vmatprep.subr.bf16.mxu0 %v2584_v5  ;;  %v2620_v14 = vpack.c.bf16 %v949_v12, %v948_v11  ;;  %v860_v15 = vld [vmem:[%s3806_s26 + $0x28] sm:$0xff]  ;;  %v950_v16 = vld [vmem:[%s3812_s10 + $0x20] sm:$0xff]  ;;  %v861_v20 = vld [vmem:[%s3806_s26 + $0x30] sm:$0xff] }
 0x162   : > { %v951_v17 = vld [vmem:[%s3812_s10 + $0x28] sm:$0xff]  ;;  %2587 = vmatpush3.bf16.msra.mxu0 %v2584_v5  ;;  %2617 = vmatprep.subr.bf16.mxu1 %v2616_v9  ;;  %v2592_v18 = vpack.c.bf16 %v860_v15, %v859_v13  ;;  %v862_v21 = vld [vmem:[%s3806_s26 + $0x38] sm:$0xff]  ;;  %v952_v22 = vld [vmem:[%s3812_s10 + $0x30] sm:$0xff] }
 0x163   : > { %2589 = vmatprep.subr.bf16.mxu0 %v2588_v10  ;;  %2619 = vmatpush3.bf16.msra.mxu1 %v2616_v9  ;;  %v2624_v19 = vpack.c.bf16 %v951_v17, %v950_v16  ;;  %v953_v23 = vld [vmem:[%s3812_s10 + $0x38] sm:$0xff]  ;;  %v2596_v24 = vpack.c.bf16 %v862_v21, %v861_v20  ;;  %v863_v25 = vld [vmem:[%s3806_s26 + $0x40] sm:$0xff]  ;;  %v864_v27 = vld [vmem:[%s3806_s26 + $0x48] sm:$0xff] }
 0x164   : > { %2621 = vmatprep.subr.bf16.mxu1 %v2620_v14  ;;  %v2628_v26 = vpack.c.bf16 %v953_v23, %v952_v22  ;;  %v954_v28 = vld [vmem:[%s3812_s10 + $0x40] sm:$0xff]  ;;  %v3861_v29 = vld [vmem:[#allocation2] sm:$0xff]  ;;  %v955_v30 = vld [vmem:[%s3812_s10 + $0x48] sm:$0xff]  ;;  %v2600_v33 = vpack.c.bf16 %v864_v27, %v863_v25 }
 0x165   : > { %2395 = vmatprep.mubr.f32.mxu0 %v3861_v29  ;;  %2430 = vmatprep.mubr.f32.mxu1 %v3861_v29  ;;  %v865_v31 = vld [vmem:[%s3806_s26 + $0x50] sm:$0xff]  ;;  %v866_v32 = vld [vmem:[%s3806_s26 + $0x58] sm:$0xff]  ;;  %v2632_v36 = vpack.c.bf16 %v955_v30, %v954_v28  ;;  %v867_v39 = vld [vmem:[%s3806_s26 + $0x60] sm:$0xff] }
 0x166   : > { %2591 = vmatpush3.bf16.msra.mxu0 %v2588_v10  ;;  %v956_v34 = vld [vmem:[%s3812_s10 + $0x50] sm:$0xff]  ;;  %v957_v35 = vld [vmem:[%s3812_s10 + $0x58] sm:$0xff]  ;;  %v2604_v37 = vpack.c.bf16 %v866_v32, %v865_v31  ;;  %v868_v40 = vld [vmem:[%s3806_s26 + $0x68] sm:$0xff] }
 0x167   : > { %2593 = vmatprep.subr.bf16.mxu0 %v2592_v18  ;;  %2623 = vmatpush3.bf16.msra.mxu1 %v2620_v14  ;;  %v2636_v38 = vpack.c.bf16 %v957_v35, %v956_v34  ;;  %v958_v41 = vld [vmem:[%s3812_s10 + $0x60] sm:$0xff]  ;;  %v959_v42 = vld [vmem:[%s3812_s10 + $0x68] sm:$0xff]  ;;  %v2608_v43 = vpack.c.bf16 %v868_v40, %v867_v39  ;;  %v869_v45 = vld [vmem:[%s3806_s26 + $0x70] sm:$0xff] }
 0x168   : > { %2625 = vmatprep.subr.bf16.mxu1 %v2624_v19  ;;  %v2640_v44 = vpack.c.bf16 %v959_v42, %v958_v41  ;;  %v870_v46 = vld [vmem:[%s3806_s26 + $0x78] sm:$0xff]  ;;  %v960_v47 = vld [vmem:[%s3812_s10 + $0x70] sm:$0xff]  ;;  %v1063_v54 = vld [vmem:[%s4342_s3 + $0x10] sm:$0xff] }
 0x169   : > { %v961_v48 = vld [vmem:[%s3812_s10 + $0x78] sm:$0xff]  ;;  %v2612_v49 = vpack.c.bf16 %v870_v46, %v869_v45  ;;  %1090 = vperm.xlu1 %2899, %v1063_v54   ;;  %v1064_v57 = vld [vmem:[%s4342_s3 + $0x18] sm:$0xff]  ;;  %v1067_v60 = vld [vmem:[%s4342_s3 + $0x30] sm:$0xff] }
 0x16a   : > { %2595 = vmatpush3.bf16.msra.mxu0 %v2592_v18  ;;  %v2644_v50 = vpack.c.bf16 %v961_v48, %v960_v47  ;;  %v3878_v51 = vld [vmem:[#allocation2 + $0x8] sm:$0xff]  ;;  %v2900_v52 = vld [vmem:[%s4341_s0] sm:$0xff]   ;;  %v1068_v61 = vld [vmem:[%s4342_s3 + $0x38] sm:$0xff] }
 0x16b   : > { %2597 = vmatprep.subr.bf16.mxu0 %v2596_v24  ;;  %2627 = vmatpush3.bf16.msra.mxu1 %v2624_v19  ;;  %v1061_v53 = vld [vmem:[%s4342_s3] sm:$0xff]  ;;  %v1062_v56 = vld [vmem:[%s4342_s3 + $0x8] sm:$0xff]  ;;  %v1071_v0 = vld [vmem:[%s4342_s3 + $0x50] sm:$0xff]  ;;  %v3318_v19 = vmov 0.0  }
 0x16c   : > { %2629 = vmatprep.subr.bf16.mxu1 %v2628_v26  ;;  %1080 = vperm.xlu0 %2898, %v1061_v53   ;;  %v1065_v58 = vld [vmem:[%s4342_s3 + $0x20] sm:$0xff]  ;;  %v1066_v59 = vld [vmem:[%s4342_s3 + $0x28] sm:$0xff]  ;;  %v1072_v1 = vld [vmem:[%s4342_s3 + $0x58] sm:$0xff] }
 0x16d   : > { %1095 = vperm.xlu1 %2899, %v1064_v57   ;;  %v1069_v62 = vld [vmem:[%s4342_s3 + $0x40] sm:$0xff]  ;;  %v1070_v63 = vld [vmem:[%s4342_s3 + $0x48] sm:$0xff]  ;;  %v1075_v4 = vld [vmem:[%s4342_s3 + $0x70] sm:$0xff] }
 0x16e   : > { %2599 = vmatpush3.bf16.msra.mxu0 %v2596_v24  ;;  %v1073_v2 = vld [vmem:[%s4342_s3 + $0x60] sm:$0xff]  ;;  %v1074_v3 = vld [vmem:[%s4342_s3 + $0x68] sm:$0xff]  ;;  %v1076_v5 = vld [vmem:[%s4342_s3 + $0x78] sm:$0xff] }
 0x16f   : > { %2601 = vmatprep.subr.bf16.mxu0 %v2600_v33  ;;  %2631 = vmatpush3.bf16.msra.mxu1 %v2628_v26  ;;  %v2901_v12 = vld [vmem:[%s4341_s0 + $0x8] sm:$0xff]   ;;  %v2902_v13 = vld [vmem:[%s4341_s0 + $0x10] sm:$0xff]   ;;  %v2903_v14 = vld [vmem:[%s4341_s0 + $0x18] sm:$0xff]  }
 0x170   : > { %2633 = vmatprep.subr.bf16.mxu1 %v2632_v36  ;;  %1085 = vperm.xlu0 %2898, %v1062_v56   ;;  %v2904_v15 = vld [vmem:[%s4341_s0 + $0x20] sm:$0xff]   ;;  %v2905_v16 = vld [vmem:[%s4341_s0 + $0x28] sm:$0xff]   ;;  %v2906_v17 = vld [vmem:[%s4341_s0 + $0x30] sm:$0xff]  }
 0x171   : > { %1105 = vperm.xlu1 %2899, %v1066_v59   ;;  %v2907_v18 = vld [vmem:[%s4341_s0 + $0x38] sm:$0xff]   ;;  %v1467_v20 = vld [vmem:[%s3820_s17 + $0x80] sm:$0xff]  ;;  %v1470_v26 = vld [vmem:[%s3820_s17 + $0x98] sm:$0xff] }
 0x172   : > { %2603 = vmatpush3.bf16.msra.mxu0 %v2600_v33  ;;  %v1468_v21 = vld [vmem:[%s3820_s17 + $0x88] sm:$0xff]  ;;  %v1451_v22 = vld [vmem:[%s3820_s17] sm:$0xff]  ;;  %v1469_v25 = vld [vmem:[%s3820_s17 + $0x90] sm:$0xff] }
 0x173   : > { %2605 = vmatprep.subr.bf16.mxu0 %v2604_v37  ;;  %2635 = vmatpush3.bf16.msra.mxu1 %v2632_v36  ;;  %v2648_v23 = vpack.c.bf16 %v1468_v21, %v1467_v20  ;;  %v1452_v24 = vld [vmem:[%s3820_s17 + $0x8] sm:$0xff]  ;;  %v2652_v28 = vpack.c.bf16 %v1470_v26, %v1469_v25  ;;  %v1453_v30 = vld [vmem:[%s3820_s17 + $0x10] sm:$0xff]  ;;  %v1454_v31 = vld [vmem:[%s3820_s17 + $0x18] sm:$0xff] }
 0x174   : > { %2637 = vmatprep.subr.bf16.mxu1 %v2636_v38  ;;  %1100 = vperm.xlu0 %2898, %v1065_v58   ;;  %v2650_v27 = vpack.c.bf16 %v1452_v24, %v1451_v22  ;;  %v1471_v32 = vld [vmem:[%s3820_s17 + $0xa0] sm:$0xff]  ;;  %v1472_v33 = vld [vmem:[%s3820_s17 + $0xa8] sm:$0xff]  ;;  %v2654_v34 = vpack.c.bf16 %v1454_v31, %v1453_v30  ;;  %v1474_v39 = vld [vmem:[%s3820_s17 + $0xb8] sm:$0xff] }
 0x175   : > { %1115 = vperm.xlu1 %2899, %v1068_v61   ;;  %v2656_v35 = vpack.c.bf16 %v1472_v33, %v1471_v32  ;;  %v1455_v36 = vld [vmem:[%s3820_s17 + $0x20] sm:$0xff]  ;;  %v1457_v42 = vld [vmem:[%s3820_s17 + $0x30] sm:$0xff]  ;;  %v1476_v45 = vld [vmem:[%s3820_s17 + $0xc8] sm:$0xff] }
 0x176   : > { %2607 = vmatpush3.bf16.msra.mxu0 %v2604_v37  ;;  %v1456_v37 = vld [vmem:[%s3820_s17 + $0x28] sm:$0xff]  ;;  %v1459_v48 = vld [vmem:[%s3820_s17 + $0x40] sm:$0xff]  ;;  %v1461_v55 = vld [vmem:[%s3820_s17 + $0x50] sm:$0xff] }
 0x177   : > { %2609 = vmatprep.subr.bf16.mxu0 %v2608_v43  ;;  %2639 = vmatpush3.bf16.msra.mxu1 %v2636_v38  ;;  %v1473_v38 = vld [vmem:[%s3820_s17 + $0xb0] sm:$0xff]  ;;  %v2658_v40 = vpack.c.bf16 %v1456_v37, %v1455_v36  ;;  %v1462_v56 = vld [vmem:[%s3820_s17 + $0x58] sm:$0xff]  ;;  %v1479_v57 = vld [vmem:[%s3820_s17 + $0xe0] sm:$0xff] }
 0x178   : > { %2641 = vmatprep.subr.bf16.mxu1 %v2640_v44  ;;  %1110 = vperm.xlu0 %2898, %v1067_v60   ;;  %v2660_v41 = vpack.c.bf16 %v1474_v39, %v1473_v38  ;;  %v1480_v58 = vld [vmem:[%s3820_s17 + $0xe8] sm:$0xff]  ;;  %v2670_v59 = vpack.c.bf16 %v1462_v56, %v1461_v55  ;;  %v1463_v61 = vld [vmem:[%s3820_s17 + $0x60] sm:$0xff]  ;;  %v4008_v20 = vld [vmem:[%s714_s28] ss:$0 sm:$0xff]  ;;  %s4344_s28 = sld [smem:[#allocation32_spill]] }
 0x179   : > { %1125 = vperm.xlu1 %2899, %v1070_v63   ;;  %v2672_v60 = vpack.c.bf16 %v1480_v58, %v1479_v57  ;;  %v1481_v63 = vld [vmem:[%s3820_s17 + $0xf0] sm:$0xff] }
 0x17a   : > { %2611 = vmatpush3.bf16.msra.mxu0 %v2608_v43  ;;  %v1458_v43 = vld [vmem:[%s3820_s17 + $0x38] sm:$0xff] }
 0x17b   : > { %2613 = vmatprep.subr.bf16.mxu0 %v2612_v49  ;;  %2643 = vmatpush3.bf16.msra.mxu1 %v2640_v44  ;;  %v1475_v44 = vld [vmem:[%s3820_s17 + $0xc0] sm:$0xff]  ;;  %v2662_v46 = vpack.c.bf16 %v1458_v43, %v1457_v42 }
 0x17c   : > { %2645 = vmatprep.subr.bf16.mxu1 %v2644_v50  ;;  %1120 = vperm.xlu0 %2898, %v1069_v62   ;;  %v2664_v47 = vpack.c.bf16 %v1476_v45, %v1475_v44  ;;  %v1464_v62 = vld [vmem:[%s3820_s17 + $0x68] sm:$0xff] }
 0x17d   : > { %1135 = vperm.xlu1 %2899, %v1072_v1   ;;  %v2674_v1 = vpack.c.bf16 %v1464_v62, %v1463_v61 }
 0x17e   : > { %2615 = vmatpush3.bf16.msra.mxu0 %v2612_v49  ;;  %v1460_v49 = vld [vmem:[%s3820_s17 + $0x48] sm:$0xff]  ;;  %p1660_p9 = scmp.eq.s32.totalorder %s4344_s28, 1 }
 0x17f   : > { %2647 = vmatpush3.bf16.msra.mxu1 %v2644_v50  ;;  %v1477_v50 = vld [vmem:[%s3820_s17 + $0xd0] sm:$0xff]  ;;  %v2666_v53 = vpack.c.bf16 %v1460_v49, %v1459_v48  ;;  %vm3321_vm2 = vmmov (%p1660_p9), 0   ;;  %vm1669_vm3 = vcmask (%p1660_p9), 130048   ;;  %s4346_s27 = sld [smem:[#allocation47_spill]] (%p1660_p9) }
 0x180   : > { %1130 = vperm.xlu0 %2898, %v1071_v0   ;;  %2453 = vmatprep.subr.bf16.mxu1 %v3318_v19  ;;  %v1482_v0 = vld [vmem:[%s3820_s17 + $0xf8] sm:$0xff] }
 0x181   : > { %2396 = vmatmul.mubr.f32.vlgmr.msra.gmra.mrb[0].mxu0 %v3878_v51  ;;  %1145 = vperm.xlu1 %2899, %v1074_v3   ;;  %v1465_v3 = vld [vmem:[%s3820_s17 + $0x70] sm:$0xff] }
 0x182   : > { %2431 = vmatmul.mubr.f32.vlgmr.msra.gmra.mrb[0].mxu1 %v3878_v51  ;;  %2437 = vmatprep.mubr.msk.bf16.mxu0 %vm1220_vm0, %v2900_v52  ;;  %v1478_v52 = vld [vmem:[%s3820_s17 + $0xd8] sm:$0xff] }
 0x183   : > { %2469 = vmatprep.mubr.msk.bf16.mxu1 %vm3319_vm1, %v3318_v19  ;;  %v2668_v54 = vpack.c.bf16 %v1478_v52, %v1477_v50 }
 0x184   : > { %1140 = vperm.xlu0 %2898, %v1073_v2   ;;  %v2676_v2 = vpack.c.bf16 %v1482_v0, %v1481_v63 }
 0x185   : > { %1155 = vperm.xlu1 %2899, %v1076_v5  }
 0x188   : > { %1150 = vperm.xlu0 %2898, %v1075_v4   ;;  %v1466_v4 = vld [vmem:[%s3820_s17 + $0x78] sm:$0xff] }
 0x189   : > { %v2678_v5 = vpack.c.bf16 %v1466_v4, %v1465_v3 }
 0x254   : > { %v2397_v6 = vpop.f32.mrb[0].mxu0 }
 0x255   : > { %v937_v7 = vpop.f32.mrb[1].mxu0  ;;  %v2432_v8 = vpop.f32.mrb[0].mxu1 }
 0x256   : > { %v1037_v9 = vpack.c.bf16 %v2397_v6, %v937_v7  ;;  %v1028_v10 = vpop.f32.mrb[1].mxu1  ;;  %v1081_v6 = vpop.permute.xlu0 %1080 }
 0x257   : > { %v1038_v11 = vpack.c.bf16 %v2432_v8, %v1028_v10  ;;  %v1091_v7 = vpop.permute.xlu1 %1090 }
 0x258   : > { %2433 = vmatprep.subr.bf16.mxu0 %v1037_v9 }
 0x259   : > { %2434 = vmatpush3.bf16.msra.mxu0 %v1037_v9 }
 0x25a   : > { %2435 = vmatprep.subr.bf16.mxu0 %v1038_v11  ;;  %v1086_v8 = vpop.permute.xlu0 %1085 }
 0x25b   : > { %v1096_v9 = vpop.permute.xlu1 %1095 }
 0x25d   : > { %2436 = vmatpush3.bf16.msra.mxu0 %v1038_v11 }
 0x25e   : > { %2649 = vmatprep.subr.bf16.mxu0 %v2648_v23  ;;  %v1101_v10 = vpop.permute.xlu0 %1100 }
 0x25f   : > { %v1106_v11 = vpop.permute.xlu1 %1105 }
 0x260   : > { %2438 = vmatmul.mubr.msk.bf16.vlgmr.msra.gmra.mrb[4].mxu0 %vm1220_vm0, %v2901_v12  ;;  %v4001_v12 = vld [vmem:[%s838_s12] ss:$0 sm:$0xff] }
 0x261   : > { %2441 = vmatprep.mubr.msk.bf16.mxu0 %vm1220_vm0, %v2902_v13  ;;  %2651 = vmatpush3.bf16.msra.mxu0 %v2650_v27  ;;  %v1165_v23 = vmul.f32 %v4001_v12, %v1086_v8  ;;  %v1168_v39 = vmul.f32 %v4001_v12, %v1101_v10  ;;  %v1169_v48 = vmul.f32 %v4001_v12, %v1106_v11 }
 0x262   : > { %2653 = vmatprep.subr.bf16.mxu0 %v2652_v28  ;;  %v1111_v13 = vpop.permute.xlu0 %1110 }
 0x263   : > { %v1170_v36 = vmul.f32 %v4001_v12, %v1111_v13 }
 0x265   : > { %2655 = vmatpush3.bf16.msra.mxu0 %v2654_v34 }
 0x266   : > { %2657 = vmatprep.subr.bf16.mxu0 %v2656_v35  ;;  %v1121_v24 = vpop.permute.xlu0 %1120 }
 0x268   : > { %2442 = vmatmul.mubr.msk.bf16.gmra.mrb[8].mxu0 %vm1220_vm0, %v2903_v14  ;;  %v1166_v14 = vmul.f32 %v4001_v12, %v1091_v7 }
 0x269   : > { %2445 = vmatprep.mubr.msk.bf16.mxu0 %vm1220_vm0, %v2904_v15  ;;  %2659 = vmatpush3.bf16.msra.mxu0 %v2658_v40  ;;  %v1116_v15 = vpop.permute.xlu1 %1115 }
 0x26a   : > { %2661 = vmatprep.subr.bf16.mxu0 %v2660_v41  ;;  %v1131_v40 = vpop.permute.xlu0 %1130  ;;  %v1171_v44 = vmul.f32 %v4001_v12, %v1116_v15 }
 0x26b   : > { %v1174_v62 = vmul.f32 %v4001_v12, %v1131_v40 }
 0x26d   : > { %2663 = vmatpush3.bf16.msra.mxu0 %v2662_v46  ;;  %v1126_v31 = vpop.permute.xlu1 %1125 }
 0x26e   : > { %2665 = vmatprep.subr.bf16.mxu0 %v2664_v47  ;;  %v1173_v10 = vmul.f32 %v4001_v12, %v1126_v31 }
 0x270   : > { %2446 = vmatmul.mubr.msk.bf16.gmra.mrb[12].mxu0 %vm1220_vm0, %v2905_v16  ;;  %v1167_v16 = vmul.f32 %v4001_v12, %v1096_v9 }
 0x271   : > { %2449 = vmatprep.mubr.msk.bf16.mxu0 %vm1220_vm0, %v2906_v17  ;;  %2667 = vmatpush3.bf16.msra.mxu0 %v2666_v53  ;;  %v1164_v17 = vmul.f32 %v4001_v12, %v1081_v6  ;;  %v1136_v49 = vpop.permute.xlu1 %1135 }
 0x272   : > { %2669 = vmatprep.subr.bf16.mxu0 %v2668_v54  ;;  %v1175_v6 = vmul.f32 %v4001_v12, %v1136_v49 }
 0x275   : > { %2671 = vmatpush3.bf16.msra.mxu0 %v2670_v59 }
 0x276   : > { %2673 = vmatprep.subr.bf16.mxu0 %v2672_v60  ;;  %v1141_v60 = vpop.permute.xlu0 %1140 }
 0x278   : > { %2450 = vmatmul.mubr.msk.bf16.gmra.mrb[16].mxu0 %vm1220_vm0, %v2907_v18 }
 0x279   : > { %2675 = vmatpush3.bf16.msra.mxu0 %v2674_v1  ;;  %v1172_v1 = vmul.f32 %v4001_v12, %v1121_v24 }
 0x27a   : > { %2677 = vmatprep.subr.bf16.mxu0 %v2676_v2  ;;  %v1146_v2 = vpop.permute.xlu1 %1145 }
 0x27d   : > { %2679 = vmatpush3.bf16.msra.mxu0 %v2678_v5 }
 0x27e   : > { %v1156_v24 = vpop.permute.xlu1 %1155 }
 0x333   : > { %v2439_v18 = vpop.f32.mrb[4].mxu0 }
 0x334   : > { %v1288_v21 = vadd.f32 %v2439_v18, %v1166_v14  ;;  %v1279_v22 = vpop.f32.mrb[5].mxu0  ;;  %v1151_v18 = vpop.permute.xlu0 %1150 }
 0x335   : > { %v1280_v25 = vadd.f32 %v1279_v22, %v1164_v17  ;;  %v2440_v26 = vpop.f32.mrb[6].mxu0 }
 0x336   : > { %v1351_v27 = vadd.f32 %v4008_v20, %v1288_v21  ;;  %v1291_v28 = vadd.f32 %v2440_v26, %v1167_v16  ;;  %v1282_v30 = vpop.f32.mrb[7].mxu0  ;;  %v1178_v26 = vmul.f32 %v4001_v12, %v1151_v18 }
 0x337   : > { %v1349_v32 = vadd.f32 %v4008_v20, %v1280_v25  ;;  %v1283_v33 = vadd.f32 %v1282_v30, %v1165_v23  ;;  %v1176_v30 = vmul.f32 %v4001_v12, %v1141_v60 }
 0x338   : > { %v1352_v34 = vadd.f32 %v4008_v20, %v1291_v28  ;;  %v1367_v37 = vmax.f32 %v1351_v27, 0.0 }
 0x339   : > { %v1350_v35 = vadd.f32 %v4008_v20, %v1283_v33  ;;  %v1365_v41 = vmax.f32 %v1349_v32, 0.0 }
 0x33a   : > { %v1368_v38 = vmax.f32 %v1352_v34, 0.0  ;;  %v1179_v34 = vmul.f32 %v4001_v12, %v1156_v24  ;;  %v2201_v24 = vld [vmem:[%s731_s5] ss:$0 sm:$0xff]  ;;  %s4345_s5 = sld [smem:[#allocation46_spill]] (%p1660_p9) }
 0x33b   : > { %v1366_v42 = vmax.f32 %v1350_v35, 0.0  ;;  %v2443_v43 = vpop.f32.mrb[8].mxu0 }
 0x33c   : > { %v1386_v45 = vpack.c.bf16 %v1368_v38, %v1367_v37  ;;  %v1304_v46 = vadd.f32 %v2443_v43, %v1170_v36  ;;  %v1295_v47 = vpop.f32.mrb[9].mxu0  ;;  %v1177_v38 = vmul.f32 %v4001_v12, %v1146_v2  ;;  %v1575_v2 = vld [vmem:[%s3827_s15 + $0x40] sm:$0xff] }
 0x33d   : > { %v1385_v50 = vpack.c.bf16 %v1366_v42, %v1365_v41  ;;  %v1296_v52 = vadd.f32 %v1295_v47, %v1168_v39  ;;  %v2444_v53 = vpop.f32.mrb[10].mxu0 }
 0x33e   : > { %v1355_v54 = vadd.f32 %v4008_v20, %v1304_v46  ;;  %v1307_v55 = vadd.f32 %v2444_v53, %v1171_v44  ;;  %v1298_v56 = vpop.f32.mrb[11].mxu0 }
 0x33f   : > { %v1353_v57 = vadd.f32 %v4008_v20, %v1296_v52  ;;  %v1299_v58 = vadd.f32 %v1298_v56, %v1169_v48  ;;  %2454 = vmatpush3.bf16.msra.mxu1 %v1385_v50  ;;  %v1568_v56 = vld [vmem:[%s3827_s15 + $0x8] sm:$0xff] }
 0x340   : > { %v1356_v59 = vadd.f32 %v4008_v20, %v1307_v55  ;;  %2455 = vmatprep.subr.bf16.mxu1 %v3318_v19  ;;  %v1371_v63 = vmax.f32 %v1355_v54, 0.0  ;;  %v1567_v55 = vld [vmem:[%s3827_s15] sm:$0xff] }
 0x341   : > { %v1354_v61 = vadd.f32 %v4008_v20, %v1299_v58  ;;  %v1369_v3 = vmax.f32 %v1353_v57, 0.0  ;;  %v2680_v57 = vpack.c.bf16 %v1568_v56, %v1567_v55  ;;  %v1570_v58 = vld [vmem:[%s3827_s15 + $0x18] sm:$0xff]  ;;  %v1723_v56 = vld [vmem:[%s4345_s5 + $0x50] sm:$0xff] (%p1660_p9) }
 0x342   : > { %v1372_v0 = vmax.f32 %v1356_v59, 0.0  ;;  %v2908_v59 = vld [vmem:[#allocation8] sm:$0xff]  }
 0x343   : > { %v1370_v4 = vmax.f32 %v1354_v61, 0.0  ;;  %v2447_v5 = vpop.f32.mrb[12].mxu0  ;;  %2456 = vmatpush3.bf16.msra.mxu1 %v1386_v45  ;;  %v1571_v61 = vld [vmem:[%s3827_s15 + $0x20] sm:$0xff] }
 0x344   : > { %v1388_v7 = vpack.c.bf16 %v1372_v0, %v1371_v63  ;;  %v1320_v8 = vadd.f32 %v2447_v5, %v1174_v62  ;;  %v1311_v9 = vpop.f32.mrb[13].mxu0  ;;  %2457 = vmatprep.subr.bf16.mxu1 %v3318_v19  ;;  %v1572_v62 = vld [vmem:[%s3827_s15 + $0x28] sm:$0xff]  ;;  %v1573_v63 = vld [vmem:[%s3827_s15 + $0x30] sm:$0xff]  ;;  %v1574_v0 = vld [vmem:[%s3827_s15 + $0x38] sm:$0xff] }
 0x345   : > { %v1387_v11 = vpack.c.bf16 %v1370_v4, %v1369_v3  ;;  %v1312_v13 = vadd.f32 %v1311_v9, %v1172_v1  ;;  %v2448_v14 = vpop.f32.mrb[14].mxu0  ;;  %v2692_v1 = vpack.c.bf16 %v1574_v0, %v1573_v63  ;;  %v1576_v3 = vld [vmem:[%s3827_s15 + $0x48] sm:$0xff]  ;;  %v1577_v5 = vld [vmem:[%s3827_s15 + $0x50] sm:$0xff]  ;;  %v1808_v0 = vld [vmem:[%s4346_s27 + $0x8] sm:$0xff] (%p1660_p9) }
 0x346   : > { %v1359_v15 = vadd.f32 %v4008_v20, %v1320_v8  ;;  %v1323_v16 = vadd.f32 %v2448_v14, %v1175_v6  ;;  %v1314_v17 = vpop.f32.mrb[15].mxu0  ;;  %v2696_v4 = vpack.c.bf16 %v1576_v3, %v1575_v2  ;;  %v1578_v6 = vld [vmem:[%s3827_s15 + $0x58] sm:$0xff]  ;;  %v1579_v8 = vld [vmem:[%s3827_s15 + $0x60] sm:$0xff]  ;;  %v1580_v9 = vld [vmem:[%s3827_s15 + $0x68] sm:$0xff] }
 0x347   : > { %v1357_v21 = vadd.f32 %v4008_v20, %v1312_v13  ;;  %v1315_v22 = vadd.f32 %v1314_v17, %v1173_v10  ;;  %2458 = vmatpush3.bf16.msra.mxu1 %v1387_v11  ;;  %v2704_v10 = vpack.c.bf16 %v1580_v9, %v1579_v8  ;;  %v1581_v11 = vld [vmem:[%s3827_s15 + $0x70] sm:$0xff]  ;;  %v1582_v13 = vld [vmem:[%s3827_s15 + $0x78] sm:$0xff]  ;;  %v1810_v3 = vld [vmem:[%s4346_s27 + $0x18] sm:$0xff] (%p1660_p9) }
 0x348   : > { %v1360_v23 = vadd.f32 %v4008_v20, %v1323_v16  ;;  %2459 = vmatprep.subr.bf16.mxu1 %v3318_v19  ;;  %v1375_v27 = vmax.f32 %v1359_v15, 0.0  ;;  %v2708_v14 = vpack.c.bf16 %v1582_v13, %v1581_v11  ;;  %v1807_v63 = vld [vmem:[%s4346_s27] sm:$0xff] (%p1660_p9)  ;;  %v1813_v8 = vld [vmem:[%s4346_s27 + $0x30] sm:$0xff] (%p1660_p9)  ;;  %v1814_v9 = vld [vmem:[%s4346_s27 + $0x38] sm:$0xff] (%p1660_p9) }
 0x349   : > { %v1358_v25 = vadd.f32 %v4008_v20, %v1315_v22  ;;  %v1373_v31 = vmax.f32 %v1357_v21, 0.0  ;;  %v2737_v2 = vpack.c.bf16 (%p1660_p9), %v1808_v0, %v1807_v63  ;;  %v1815_v11 = vld [vmem:[%s4346_s27 + $0x40] sm:$0xff] (%p1660_p9)  ;;  %v1816_v13 = vld [vmem:[%s4346_s27 + $0x48] sm:$0xff] (%p1660_p9) }
 0x34a   : > { %v1376_v28 = vmax.f32 %v1360_v23, 0.0 }
 0x34b   : > { %v1374_v32 = vmax.f32 %v1358_v25, 0.0  ;;  %v2451_v33 = vpop.f32.mrb[16].mxu0  ;;  %2460 = vmatpush3.bf16.msra.mxu1 %v1388_v7  ;;  %v2700_v7 = vpack.c.bf16 %v1578_v6, %v1577_v5  ;;  %v1811_v5 = vld [vmem:[%s4346_s27 + $0x20] sm:$0xff] (%p1660_p9)  ;;  %v1812_v6 = vld [vmem:[%s4346_s27 + $0x28] sm:$0xff] (%p1660_p9) }
 0x34c   : > { %v1390_v35 = vpack.c.bf16 %v1376_v28, %v1375_v27  ;;  %v1336_v36 = vadd.f32 %v2451_v33, %v1178_v26  ;;  %v1327_v37 = vpop.f32.mrb[17].mxu0  ;;  %2461 = vmatprep.subr.bf16.mxu1 %v3318_v19 }
 0x34d   : > { %v1389_v39 = vpack.c.bf16 %v1374_v32, %v1373_v31  ;;  %v1328_v40 = vadd.f32 %v1327_v37, %v1176_v30  ;;  %v2452_v41 = vpop.f32.mrb[18].mxu0  ;;  %v3320_v37 = vmov (%p1660_p9), 0.0  }
 0x34e   : > { %v1363_v42 = vadd.f32 %v4008_v20, %v1336_v36  ;;  %v1339_v43 = vadd.f32 %v2452_v41, %v1179_v34  ;;  %v1330_v44 = vpop.f32.mrb[19].mxu0  ;;  %2508 = vmatprep.subr.bf16.mxu0 (%p1660_p9), %v3320_v37  ;;  %v1715_v41 = vld [vmem:[%s4345_s5 + $0x10] sm:$0xff] (%p1660_p9) }
 0x34f   : > { %v1361_v45 = vadd.f32 %v4008_v20, %v1328_v40  ;;  %v1331_v46 = vadd.f32 %v1330_v44, %v1177_v38  ;;  %2462 = vmatpush3.bf16.msra.mxu1 %v1389_v39  ;;  %v1713_v39 = vld [vmem:[%s4345_s5] sm:$0xff] (%p1660_p9)  ;;  %v1714_v40 = vld [vmem:[%s4345_s5 + $0x8] sm:$0xff] (%p1660_p9)  ;;  %v1716_v44 = vld [vmem:[%s4345_s5 + $0x18] sm:$0xff] (%p1660_p9) }
 0x350   : > { %v1364_v47 = vadd.f32 %v4008_v20, %v1339_v43  ;;  %2463 = vmatprep.subr.bf16.mxu1 %v3318_v19  ;;  %v1379_v48 = vmax.f32 %v1363_v42, 0.0  ;;  %v3322_v42 = vmov (%p1660_p9), 0.0|0.0   ;;  %v2713_v43 = vpack.c.bf16 (%p1660_p9), %v1714_v40, %v1713_v39 }
 0x351   : > { %v1362_v12 = vadd.f32 %v4008_v20, %v1331_v46  ;;  %v1377_v50 = vmax.f32 %v1361_v45, 0.0  ;;  %v1569_v20 = vld [vmem:[%s3827_s15 + $0x10] sm:$0xff]  ;;  %v1665_v45 = vld [vmem:[#allocation10] sm:$0xf] (%p1660_p9)  ;;  %v2716_v46 = vpack.c.bf16 (%p1660_p9), %v1716_v44, %v1715_v41  ;;  %s4347_s15 = sld [smem:[#allocation48_spill]] (%p1660_p9) }
 0x352   : > { %v1380_v49 = vmax.f32 %v1364_v47, 0.0  ;;  %v2684_v60 = vpack.c.bf16 %v1570_v58, %v1569_v20  ;;  %v1717_v47 = vld [vmem:[%s4345_s5 + $0x20] sm:$0xff] (%p1660_p9) }
 0x353   : > { %v1378_v52 = vmax.f32 %v1362_v12, 0.0  ;;  %2464 = vmatpush3.bf16.msra.mxu1 %v1390_v35  ;;  %v1718_v12 = vld [vmem:[%s4345_s5 + $0x28] sm:$0xff] (%p1660_p9)  ;;  %v1725_v58 = vld [vmem:[%s4345_s5 + $0x60] sm:$0xff] (%p1660_p9) }
 0x354   : > { %v1392_v53 = vpack.c.bf16 %v1380_v49, %v1379_v48  ;;  %2465 = vmatprep.subr.bf16.mxu1 %v3318_v19  ;;  %v2719_v48 = vpack.c.bf16 (%p1660_p9), %v1718_v12, %v1717_v47  ;;  %v1719_v49 = vld [vmem:[%s4345_s5 + $0x30] sm:$0xff] (%p1660_p9) }
 0x355   : > { %v1391_v54 = vpack.c.bf16 %v1378_v52, %v1377_v50  ;;  %v1720_v50 = vld [vmem:[%s4345_s5 + $0x38] sm:$0xff] (%p1660_p9) }
 0x356   : > { %v2722_v52 = vpack.c.bf16 (%p1660_p9), %v1720_v50, %v1719_v49 }
 0x357   : > { %2466 = vmatpush3.bf16.msra.mxu1 %v1391_v54  ;;  %v1722_v54 = vld [vmem:[%s4345_s5 + $0x48] sm:$0xff] (%p1660_p9) }
 0x358   : > { %2467 = vmatprep.subr.bf16.mxu1 %v3318_v19  ;;  %v2688_v19 = vpack.c.bf16 %v1572_v62, %v1571_v61  ;;  %v1727_v61 = vld [vmem:[%s4345_s5 + $0x70] sm:$0xff] (%p1660_p9)  ;;  %v1728_v62 = vld [vmem:[%s4345_s5 + $0x78] sm:$0xff] (%p1660_p9) }
 0x35b   : > { %2468 = vmatpush3.bf16.msra.mxu1 %v1392_v53  ;;  %v1721_v53 = vld [vmem:[%s4345_s5 + $0x40] sm:$0xff] (%p1660_p9) }
 0x35c   : > { %2681 = vmatprep.subr.bf16.mxu1 %v2680_v57  ;;  %v2725_v55 = vpack.c.bf16 (%p1660_p9), %v1722_v54, %v1721_v53 }
 0x35e   : > { %2470 = vmatmul.mubr.bf16.vlgmr.msra.gmra.mrb[4].mxu1 %v2908_v59  ;;  %v1726_v59 = vld [vmem:[%s4345_s5 + $0x68] sm:$0xff] (%p1660_p9) }
 0x35f   : > { %2683 = vmatpush3.bf16.msra.mxu1 %v2680_v57  ;;  %2505 = vmatprep.mubr.f32.mxu1 %v3861_v29  ;;  %v1724_v57 = vld [vmem:[%s4345_s5 + $0x58] sm:$0xff] (%p1660_p9) }
 0x360   : > { %2685 = vmatprep.subr.bf16.mxu1 %v2684_v60  ;;  %v2728_v20 = vpack.c.bf16 (%p1660_p9), %v1724_v57, %v1723_v56 }
 0x363   : > { %2687 = vmatpush3.bf16.msra.mxu1 %v2684_v60  ;;  %v2731_v60 = vpack.c.bf16 (%p1660_p9), %v1726_v59, %v1725_v58 }
 0x364   : > { %2689 = vmatprep.subr.bf16.mxu1 %v2688_v19 }
 0x367   : > { %2691 = vmatpush3.bf16.msra.mxu1 %v2688_v19  ;;  %v2734_v19 = vpack.c.bf16 (%p1660_p9), %v1728_v62, %v1727_v61 }
 0x368   : > { %2693 = vmatprep.subr.bf16.mxu1 %v2692_v1 }
 0x36b   : > { %2695 = vmatpush3.bf16.msra.mxu1 %v2692_v1  ;;  %v1809_v1 = vld [vmem:[%s4346_s27 + $0x10] sm:$0xff] (%p1660_p9) }
 0x36c   : > { %2697 = vmatprep.subr.bf16.mxu1 %v2696_v4 }
 0x36f   : > { %2699 = vmatpush3.bf16.msra.mxu1 %v2696_v4  ;;  %v2740_v4 = vpack.c.bf16 (%p1660_p9), %v1810_v3, %v1809_v1 }
 0x370   : > { %2701 = vmatprep.subr.bf16.mxu1 %v2700_v7 }
 0x373   : > { %2703 = vmatpush3.bf16.msra.mxu1 %v2700_v7  ;;  %v2743_v7 = vpack.c.bf16 (%p1660_p9), %v1812_v6, %v1811_v5 }
 0x374   : > { %2705 = vmatprep.subr.bf16.mxu1 %v2704_v10 }
 0x377   : > { %2707 = vmatpush3.bf16.msra.mxu1 %v2704_v10  ;;  %v2746_v10 = vpack.c.bf16 (%p1660_p9), %v1814_v9, %v1813_v8 }
 0x378   : > { %2709 = vmatprep.subr.bf16.mxu1 %v2708_v14 }
 0x37b   : > { %2711 = vmatpush3.bf16.msra.mxu1 %v2708_v14  ;;  %v2749_v14 = vpack.c.bf16 (%p1660_p9), %v1816_v13, %v1815_v11 }
 0x37c   : > { %2712 = vmatprep.subr.bf16.mxu1 (%p1660_p9), %v3322_v42 }
 0x37e   : > { %2506 = vmatmul.mubr.f32.vlgmr.msra.gmra.mrb[2].mxu1 %v3878_v51 }
 0x37f   : > { %2546 = vmatprep.mubr.msk.f32.mxu1 (%p1660_p9), %vm3321_vm2, %v3320_v37  ;;  %2714 = vmatpush3.bf16.msra.mxu1 (%p1660_p9), %v2713_v43 }
 0x380   : > { %2715 = vmatprep.subr.bf16.mxu1 (%p1660_p9), %v3322_v42 }
 0x383   : > { %2717 = vmatpush3.bf16.msra.mxu1 (%p1660_p9), %v2716_v46 }
 0x384   : > { %2718 = vmatprep.subr.bf16.mxu1 (%p1660_p9), %v3322_v42 }
 0x387   : > { %2720 = vmatpush3.bf16.msra.mxu1 (%p1660_p9), %v2719_v48 }
 0x388   : > { %2721 = vmatprep.subr.bf16.mxu1 (%p1660_p9), %v3322_v42 }
 0x38b   : > { %2723 = vmatpush3.bf16.msra.mxu1 (%p1660_p9), %v2722_v52 }
 0x38c   : > { %2724 = vmatprep.subr.bf16.mxu1 (%p1660_p9), %v3322_v42 }
 0x38f   : > { %2726 = vmatpush3.bf16.msra.mxu1 (%p1660_p9), %v2725_v55 }
 0x390   : > { %2727 = vmatprep.subr.bf16.mxu1 (%p1660_p9), %v3322_v42 }
 0x393   : > { %2729 = vmatpush3.bf16.msra.mxu1 (%p1660_p9), %v2728_v20 }
 0x394   : > { %2730 = vmatprep.subr.bf16.mxu1 (%p1660_p9), %v3322_v42 }
 0x397   : > { %2732 = vmatpush3.bf16.msra.mxu1 (%p1660_p9), %v2731_v60 }
 0x398   : > { %2733 = vmatprep.subr.bf16.mxu1 (%p1660_p9), %v3322_v42 }
 0x39b   : > { %2735 = vmatpush3.bf16.msra.mxu1 (%p1660_p9), %v2734_v19 }
 0x431   : > { %v1433_v15 = vpop.f32.mrb[4].mxu1 }
 0x432   : > { %v2471_v16 = vpop.f32.mrb[5].mxu1  ;;  %1554 = vmatprep.mubr.f32.mxu0 %v1433_v15  ;;  %v1817_v15 = vld [vmem:[%s4346_s27 + $0x50] sm:$0xff] (%p1660_p9) }
 0x433   : > { %v1436_v17 = vpop.f32.mrb[6].mxu1  ;;  %1555 = vmatmul.mubr.f32.vlgmr.msra.gmra.mrb[2].mxu0 %v3861_v29  ;;  %v1818_v16 = vld [vmem:[%s4346_s27 + $0x58] sm:$0xff] (%p1660_p9) }
 0x434   : > { %v2472_v18 = vpop.f32.mrb[7].mxu1  ;;  %1559 = vmatprep.mubr.f32.mxu0 %v1436_v17  ;;  %v2752_v17 = vpack.c.bf16 (%p1660_p9), %v1818_v16, %v1817_v15 }
 0x435   : > { %v1819_v18 = vld [vmem:[%s4346_s27 + $0x60] sm:$0xff] (%p1660_p9) }
 0x437   : > { %1560 = vmatmul.mubr.f32.gmra.mrb[20].mxu0 %v3878_v51 }
 0x438   : > { %2510 = vmatprep.mubr.msk.bf16.mxu0 (%p1660_p9), %vm3321_vm2, %v3320_v37 }
 0x451   : > { %v2507_v21 = vpop.f32.mrb[2].mxu1 }
 0x452   : > { %v1649_v22 = vpop.f32.mrb[3].mxu1 }
 0x506   : > { %v2303_v23 = vpop.f32.mrb[2].mxu0 }
 0x507   : > { %v2304_v25 = vpop.f32.mrb[3].mxu0 }
 0x508   : > { %v2305_v26 = vadd.f32 %v2304_v25, %v2303_v23 }
 0x50a   : > { %v1557_v27 = vadd.f32 %v2305_v26, %v2201_v24  ;;  %v2306_v28 = vpop.f32.mrb[20].mxu0 }
 0x50b   : > { %v2307_v30 = vpop.f32.mrb[21].mxu0 }
 0x50c   : > { %v2308_v31 = vadd.f32 %v2307_v30, %v2306_v28  ;;  %v1565_v32 = vmax.f32 %v1557_v27, 0.0  ;;  %v1821_v27 = vld [vmem:[%s4346_s27 + $0x70] sm:$0xff] (%p1660_p9)  ;;  %v1822_v28 = vld [vmem:[%s4346_s27 + $0x78] sm:$0xff] (%p1660_p9) }
 0x50d   : > { %v2758_v30 = vpack.c.bf16 (%p1660_p9), %v1822_v28, %v1821_v27 }
 0x50e   : > { %v1562_v33 = vadd.f32 %v2308_v31, %v2201_v24  ;;  %v1650_v34 = vadd.f32 %v1649_v22, %v1565_v32  ;;  %1664 = sbr.rel (!%p1660_p9) target bundleno = 1956 (0x7a4), region = 140  ;;  %v2204_v31 = vld [vmem:[#allocation20] ss:$0 sm:$0xff] (%p1660_p9) }
 0x510   : > { %v1566_v29 = vmax.f32 %v1562_v33, 0.0  ;;  %1658 = vst [vmem:[#allocation2] sm:$0xff] %v1650_v34 }
 0x512   : > { %v1655_v35 = vadd.f32 %v2507_v21, %v1566_v29  ;;  %v1820_v21 = vld [vmem:[%s4346_s27 + $0x68] sm:$0xff] (%p1660_p9) }
 0x513   : > { %v2755_v22 = vpack.c.bf16 (%p1660_p9), %v1820_v21, %v1819_v18 }
 0x514   : > { %1659 = vst [vmem:[#allocation2 + $0x8] sm:$0xff] %v1655_v35  ;;  %v2205_v35 = vld [vmem:[%s4347_s15] ss:$0 sm:$0xff] (%p1660_p9) }
 0x517   : > { %v1666_v51 = vld [vmem:[#allocation2] sm:$0xff] }
 0x51b   : > { %v1667_v36 = vld [vmem:[#allocation2 + $0x8] sm:$0xff] }
 0x51c   : > { %v1668_v38 = vpack.c.bf16 %v1667_v36, %v1666_v51 }
 0x51e   : > { %2509 = vmatpush3.bf16.msra.mxu0 %v1668_v38 }
 0x51f   : > { %2736 = vmatprep.subr.bf16.mxu0 %v3322_v42 }
 0x521   : > { %2511 = vmatmul.mubr.msk.bf16.vlgmr.msra.gmra.mrb[0].mxu0 %vm1669_vm3, %v1665_v45 }
 0x522   : > { %2581 = vmatprep.mubr.msk.f32.mxu0 %vm3321_vm2, %v3320_v37  ;;  %2738 = vmatpush3.bf16.msra.mxu0 %v2737_v2 }
 0x523   : > { %2739 = vmatprep.subr.bf16.mxu0 %v3322_v42 }
 0x526   : > { %2741 = vmatpush3.bf16.msra.mxu0 %v2740_v4 }
 0x527   : > { %2742 = vmatprep.subr.bf16.mxu0 %v3322_v42 }
 0x52a   : > { %2744 = vmatpush3.bf16.msra.mxu0 %v2743_v7 }
 0x52b   : > { %2745 = vmatprep.subr.bf16.mxu0 %v3322_v42 }
 0x52e   : > { %2747 = vmatpush3.bf16.msra.mxu0 %v2746_v10 }
 0x52f   : > { %2748 = vmatprep.subr.bf16.mxu0 %v3322_v42 }
 0x532   : > { %2750 = vmatpush3.bf16.msra.mxu0 %v2749_v14 }
 0x533   : > { %2751 = vmatprep.subr.bf16.mxu0 %v3322_v42 }
 0x536   : > { %2753 = vmatpush3.bf16.msra.mxu0 %v2752_v17 }
 0x537   : > { %2754 = vmatprep.subr.bf16.mxu0 %v3322_v42 }
 0x53a   : > { %2756 = vmatpush3.bf16.msra.mxu0 %v2755_v22 }
 0x53b   : > { %2757 = vmatprep.subr.bf16.mxu0 %v3322_v42 }
 0x53e   : > { %2759 = vmatpush3.bf16.msra.mxu0 %v2758_v30 }
 0x5f4   : > { %v1707_v23 = vpop.f32.mrb[0].mxu0 }
 0x5f5   : > { %v2512_v24 = vpop.f32.mrb[1].mxu0  ;;  %2547 = vmatmul.mubr.f32.vlgmr.msra.gmra.mrb[0].mxu1 %v1707_v23 }
 0x5f6   : > { %v1710_v25 = vpop.f32.mrb[2].mxu0 }
 0x5f7   : > { %v2513_v26 = vpop.f32.mrb[3].mxu0 }
 0x6c8   : > { %v1802_v32 = vpop.f32.mrb[0].mxu1 }
 0x6c9   : > { %v1803_v33 = vadd.f32 %v2204_v31, %v1802_v32  ;;  %v2548_v34 = vpop.f32.mrb[1].mxu1 }
 0x6cb   : > { %v1806_v29 = vmax.f32 %v1803_v33, 0.0 }
 0x6cd   : > { %2582 = vmatmul.mubr.f32.vlgmr.msra.gmra.mrb[4].mxu0 %v1806_v29 }
 0x7a0   : > { %v1896_v51 = vpop.f32.mrb[4].mxu0 }
 0x7a1   : > { %v1897_v36 = vadd.f32 %v2205_v35, %v1896_v51  ;;  %v2583_v37 = vpop.f32.mrb[5].mxu0 }
 0x7a3   : > { %1900 = vst [vmem:[#allocation22] sm:$0xff] %v1897_v36 }
 0x7a4 PF: > { %s4348_s1 = sld [smem:[#allocation34_spill]]  ;;  %s3323_s12 = smov [#allocation22]  }
 0x7a5   : > { %s1908_s2 = sshll.u32 %s3323_s12, 4  ;;  %s1909_s2 = int_to_ptr.vmem [resolvable:$true] %s1908_s2 }
 0x7a6   : > { %s3201_s20 = scalar_lea.vmem %s1909_s2, 128  ;;  %p3208_p3 = scmp.lt.s32.totalorder %s1909_s2, %s1909_s2 }
 0x7a7   : > { %p3202_p10 = scmp.ne.s32.totalorder %s1909_s2, %s3201_s20  ;;  %p3209_p8 = scmp.lt.s32.totalorder %s3201_s20, %s3201_s20 }
 0x7a9   : > { %p3210_p2 = por %p3209_p8, %p3208_p3 }
 0x7aa   : > { %p2833_p12 = scmp.eq.s32.totalorder %s4348_s1, 1 }
 0x7ac   : > { %p3203_p13 = pnand %p3202_p10, %p2833_p12 }
 0x7ae   : > { %p3204_p11 = pneg %p3203_p13 }
 0x7b0   : > { %p3211_p6 = pnand %p3210_p2, %p3204_p11 }
 0x7b2   : > { %3214 = shalt.err (!%p3211_p6)
}
 0x7b3   : > { %s4349_s7 = sld [smem:[#allocation49_spill]] }
 0x7b9   : > { %s3215_s26 = scalar_lea.hbm %s4349_s7, 128 }
 0x7ba   : > { %p3216_p0 = scmp.ne.s32.totalorder %s4349_s7, %s3215_s26  ;;  %p3221_p5 = scmp.lt.u32.totalorder %s3215_s26, %s4349_s7 }
 0x7bc   : > { %p3217_p1 = pnand %p3216_p0, %p2833_p12 }
 0x7be   : > { %p3218_p7 = pneg %p3217_p1 }
 0x7c0   : > { %p3223_p4 = pnand %p3221_p5, %p3218_p7 }
 0x7c2   : > { %3226 = shalt.err (!%p3223_p4)
}
 0x7c3   : > { %2789 = dma.vmem_to_hbm [thread:$0]  (%p2833_p12), %s1909_s2, 128, %s4349_s7, [#allocation7]  }
 0x7c4   : > { %3276 = dma.done.wait (%p2833_p12), [#allocation7], 128  }
 0x7c5   : > { %3278 = vsyncadd (%p2833_p12), [#allocation7], 4294967168 }
 0x7c6 PF: > { %s4350_s22 = sld [smem:[#allocation33_spill]]  ;;  %s4351_s21 = sld [smem:[#allocation30_spill]] }
 0x7c7   : > { %s4353_s23 = sld [smem:[#allocation37_spill]]  ;;  %s4354_s30 = sld [smem:[#allocation36_spill]] }
 0x7c8   : > { %s4355_s24 = smov %s3297_s25 }
 0x7cc   : > { %s39_s26 = sadd.s32 1, %s4350_s22   ;;  %s4352_s22 = sld [smem:[#allocation31_spill]] }
 0x7cd   : > { %p36_p9 = scmp.ge.s32.totalorder %s39_s26, 4   ;;  %s4356_s25 = smov %s4354_s30 }
 0x7cf   :  { %38 = sbr.rel (!%p36_p9) target bundleno = 25 (0x19), region = 223 }
 0x7d6   :  { %1921 = vsyncpa [#allocation6], 1 }
 0x7d7   :  { %1923 = vsyncpa [#allocation6 + $0x1], 1 }
 0x7d8   :  { %1924 = vsyncpa [#allocation9], 1 }
 0x7d9   :  { %1925 = vsyncpa [#allocation12], 1 }
 0x7da   :  { %1927 = vsyncpa [#allocation12 + $0x1], 1 }
 0x7db   :  { %1928 = vsyncpa [#allocation15], 1 }
 0x7dc   :  { %1930 = vsyncpa [#allocation15 + $0x1], 1 }
 0x7dd   :  { %1931 = vsyncpa [#allocation18], 1 }
 0x7de   :  { %1933 = vsyncpa [#allocation18 + $0x1], 1 }
 0x7df   :  { %1934 = vsyncpa [#allocation21], 1 }
 0x7e0   :  { %1935 = vsyncpa [#allocation7], 1 }
 0x7e1   :  { %1937 = vsyncpa [#allocation7 + $0x1], 1 }

</bundles_post_ra>
